<compile_context>
chip_gen: v6e
topology: v6e:2x2x1
jax: 0.10.0
libtpu: 0.0.40
codegen_flags: <defaults>
</compile_context>

<pallas_src>
import functools

import jax
import jax.numpy as jnp
from jax import lax
from jax.experimental import pallas as pl
from jax.experimental.pallas import tpu as pltpu


def _pick_row_block(Ho, Wo, W, stride):
  """Smallest output-row block keeping input & output blocks lane-dense."""
  for tho in range(1, Ho):
    if Ho % tho == 0 and (tho * Wo) % 128 == 0 and (tho * stride * W) % 128 == 0:
      return tho
  return Ho   # fall back to one block per image (full-extent minor dims)


def _inverted_residual_kernel(
    x_main_ref, x_top_ref, x_bot_ref,
    w1_ref, s1_ref, b1_ref, wdw_ref, s2_ref, b2_ref, w3_ref, s3_ref, b3_ref,
    o_ref, *scratch,
    stride, has_expand, use_res, W, Wo, tho, Kp, cout):
  f32 = jnp.float32
  R = (tho - 1) * stride + 3            # depthwise input rows incl. 3x3 halo
  BM = tho * stride * W                 # flattened lanes of the main x block

  # ---- gather the input window (halo row(s) + own rows) as (R*W, Cin) ------
  # x stays in its NCHW HBM layout (H*W flattened on the lane axis); tiny 2-D
  # transposes move channels onto lanes for everything downstream.
  parts = [x_top_ref[0][:, BM - W:].T]                 # row rs-1 (masked at top edge)
  parts.append(x_main_ref[0].T)                        # rows rs .. rs+tho*stride-1
  if stride == 1:
    parts.append(x_bot_ref[0][:, :W].T)                # row rs+tho (masked at bottom)
  xwin = jnp.concatenate(parts, axis=0)                # (R*W, Cin) f32

  # ---- 1x1 expand conv (+ folded BN + ReLU6): bf16 MXU matmul, f32 accum ---
  if has_expand:
    h = jnp.dot(xwin.astype(jnp.bfloat16), w1_ref[...],
                preferred_element_type=f32)            # (R*W, Kp)
    h = jnp.clip(h * s1_ref[...] + b1_ref[...], 0.0, 6.0)
  else:
    # expand_ratio == 1: no expand conv; w1 is a (Cin, Kp) f32 identity pad.
    h = jnp.dot(xwin, w1_ref[...], preferred_element_type=f32)

  # ---- zero halo rows lying outside the image (depthwise zero padding) -----
  hb = pl.program_id(1)
  ridx = lax.broadcasted_iota(jnp.int32, (R * W, 1), 0)
  keep = jnp.where(ridx < W, (hb > 0).astype(f32), 1.0)
  if stride == 1:
    keep = keep * jnp.where(ridx >= (R - 1) * W,
                            (hb < pl.num_programs(1) - 1).astype(f32), 1.0)
  h = h * keep

  # ---- depthwise 3x3 conv + folded BN + ReLU6 ------------------------------
  wdw = wdw_ref[...]                                   # (9, Kp), hoisted once
  if stride == 1:
    # Build the three W-shifted copies once; reuse them for every ki.  Row
    # shifts (ki) become aligned static slices on the flattened row axis.
    zrow = jnp.zeros((1, Kp), f32)
    col = ridx % W
    h_l = jnp.where(col == 0, 0.0, jnp.concatenate([zrow, h[:-1]], axis=0))
    h_r = jnp.where(col == W - 1, 0.0, jnp.concatenate([h[1:], zrow], axis=0))
    taps = (h_l, h, h_r)
    acc = jnp.zeros((tho * W, Kp), f32)
    for ki in range(3):
      base = ki * W                                    # sublane-aligned
      for kj in range(3):
        acc = acc + taps[kj][base:base + tho * W] * wdw[3 * ki + kj]
  else:
    # stride 2: zero-bordered VMEM scratch + strided pl.ds reads keep the
    # column stride off the vector-value path; only the 2 border columns are
    # zeroed (interior fully overwritten every step).
    dw = scratch[0]                                    # (R, W + 2, Kp)
    dw[:, pl.ds(0, 1), :] = jnp.zeros((R, 1, Kp), f32)
    dw[:, pl.ds(W + 1, 1), :] = jnp.zeros((R, 1, Kp), f32)
    dw[:, pl.ds(1, W), :] = h.reshape(R, W, Kp)
    acc3 = jnp.zeros((tho, Wo, Kp), f32)
    for ki in range(3):
      for kj in range(3):
        tap = dw[pl.ds(ki, tho, stride), pl.ds(kj, Wo, stride), :]
        acc3 = acc3 + tap * wdw[3 * ki + kj]
    acc = acc3.reshape(tho * Wo, Kp)
  acc = jnp.clip(acc * s2_ref[...] + b2_ref[...], 0.0, 6.0)

  # ---- 1x1 project conv + folded BN (linear) -------------------------------
  y = jnp.dot(acc.astype(jnp.bfloat16), w3_ref[...],
              preferred_element_type=f32)              # (tho*Wo, Cout)
  y = (y * s3_ref[...] + b3_ref[...]).T                # (Cout, tho*Wo): NCHW rows

  if use_res:                                          # re-read x at the end
    y = y + x_main_ref[0]
  o_ref[0] = y.astype(o_ref.dtype)


def make_inverted_residual(in_channels, out_channels, stride, expand_ratio, H, W):
  cin, cout = in_channels, out_channels
  hidden = int(round(cin * expand_ratio))
  has_expand = expand_ratio != 1
  use_res = (stride == 1) and (cin == cout)
  Ho = (H + 2 - 3) // stride + 1
  Wo = (W + 2 - 3) // stride + 1
  Kp = pl.cdiv(hidden, 128) * 128                      # lane-dense hidden dim

  tho = _pick_row_block(Ho, Wo, W, stride)             # output rows per block
  n_hblk = Ho // tho
  BM = tho * stride * W                                # input lanes per block
  R = (tho - 1) * stride + 3
  assert Ho % tho == 0 and (H * W) % BM == 0

  kernel = functools.partial(
      _inverted_residual_kernel, stride=stride, has_expand=has_expand,
      use_res=use_res, W=W, Wo=Wo, tho=tho, Kp=Kp, cout=cout)

  def _const_spec(shape):
    return pl.BlockSpec(shape, lambda *_: (0,) * len(shape))

  def fwd(x_nchw, params):
    N = x_nchw.shape[0]
    # Row-major (N,C,H,W) -> (N,C,H*W) is a pure metadata reshape (no HBM pass).
    x_flat = x_nchw.reshape(N, cin, H * W)

    # Pack / fold parameters into the kernel's lane-padded layouts.
    padc = Kp - hidden
    if has_expand:
      w1 = jnp.pad(params["w1_hwio"][0, 0], ((0, 0), (0, padc))).astype(jnp.bfloat16)
      s1 = jnp.pad(params["s1"], (0, padc)).reshape(1, Kp)
      b1 = jnp.pad(params["b1"], (0, padc)).reshape(1, Kp)
    else:
      w1 = jnp.eye(cin, Kp, dtype=jnp.float32)         # identity "expand"
      s1 = jnp.zeros((1, Kp), jnp.float32)
      b1 = jnp.zeros((1, Kp), jnp.float32)
    wdw = jnp.pad(params["wdw_hwio"][:, :, 0, :].reshape(9, hidden),
                  ((0, 0), (0, padc)))
    s2 = jnp.pad(params["s2"], (0, padc)).reshape(1, Kp)
    b2 = jnp.pad(params["b2"], (0, padc)).reshape(1, Kp)
    w3 = jnp.pad(params["w3_hwio"][0, 0], ((0, padc), (0, 0))).astype(jnp.bfloat16)
    s3 = params["s3"].reshape(1, cout)
    b3 = params["b3"].reshape(1, cout)

    grid_spec = pltpu.PrefetchScalarGridSpec(
        num_scalar_prefetch=0,
        grid=(N, n_hblk),
        in_specs=[
            # own rows of this block
            pl.BlockSpec((1, cin, BM), lambda n, hb: (n, 0, hb)),
            # previous block (its last row is the top halo); clamped at edge
            pl.BlockSpec((1, cin, BM),
                         lambda n, hb: (n, 0, jnp.maximum(hb - 1, 0))),
            # next block (its first row is the bottom halo); clamped at edge
            pl.BlockSpec((1, cin, BM),
                         lambda n, hb: (n, 0, jnp.minimum(hb + 1, n_hblk - 1))),
            _const_spec((cin, Kp)),                     # expand weight
            _const_spec((1, Kp)), _const_spec((1, Kp)), # expand BN scale/bias
            _const_spec((9, Kp)),                       # depthwise weight
            _const_spec((1, Kp)), _const_spec((1, Kp)), # dw BN scale/bias
            _const_spec((Kp, cout)),                    # project weight
            _const_spec((1, cout)), _const_spec((1, cout)),  # proj BN
        ],
        out_specs=pl.BlockSpec((1, cout, tho * Wo), lambda n, hb: (n, 0, hb)),
        scratch_shapes=([] if stride == 1
                        else [pltpu.VMEM((R, W + 2, Kp), jnp.float32)]),
    )
    out_flat = pl.pallas_call(
        kernel,
        grid_spec=grid_spec,
        out_shape=jax.ShapeDtypeStruct((N, cout, Ho * Wo), x_nchw.dtype),
        compiler_params=pltpu.CompilerParams(
            dimension_semantics=("parallel", "parallel"),
            vmem_limit_bytes=32 * 1024 * 1024),
    )(x_flat, x_flat, x_flat, w1, s1, b1, wdw, s2, b2, w3, s3, b3)
    return out_flat.reshape(N, cout, Ho, Wo)            # free reshape

  return jax.jit(fwd), hidden, use_res


def init_params(key, in_channels, out_channels, expand_ratio, eps=1e-5):
  """Deterministic synthetic parameters (PyTorch conv layouts, eval-mode BN
  folded into per-channel scale/bias)."""
  cin, cout = in_channels, out_channels
  hidden = int(round(cin * expand_ratio))
  ks = jax.random.split(key, 15)

  def bn(kg, kb, km, kv, c):
    gamma = 1.0 + 0.1 * jax.random.normal(kg, (c,), jnp.float32)
    beta = 0.1 * jax.random.normal(kb, (c,), jnp.float32)
    mean = 0.05 * jax.random.normal(km, (c,), jnp.float32)
    var = 1.0 + 0.1 * jnp.abs(jax.random.normal(kv, (c,), jnp.float32))
    scale = gamma / jnp.sqrt(var + eps)
    return scale, beta - mean * scale

  w1_t = 0.2 * jax.random.normal(ks[0], (hidden, cin, 1, 1), jnp.float32)
  wdw_t = 0.2 * jax.random.normal(ks[1], (hidden, 1, 3, 3), jnp.float32)
  w3_t = 0.2 * jax.random.normal(ks[2], (cout, hidden, 1, 1), jnp.float32)
  s1, b1 = bn(ks[3], ks[4], ks[5], ks[6], hidden)
  s2, b2 = bn(ks[7], ks[8], ks[9], ks[10], hidden)
  s3, b3 = bn(ks[11], ks[12], ks[13], ks[14], cout)

  return {
      "w1_hwio": jnp.transpose(w1_t, (2, 3, 1, 0)),     # (1,1,Cin,hidden)
      "wdw_hwio": jnp.transpose(wdw_t, (2, 3, 1, 0)),   # (3,3,1,hidden)
      "w3_hwio": jnp.transpose(w3_t, (2, 3, 1, 0)),     # (1,1,hidden,Cout)
      "s1": s1, "b1": b1, "s2": s2, "b2": b2, "s3": s3, "b3": b3,
  }


def reference_forward(x_nchw, p, stride, expand_ratio, cin, cout):
  """Pure-JAX reference (eval-mode BN, bf16 1x1 convs to match the kernel)."""
  x = jnp.transpose(x_nchw, (0, 2, 3, 1))
  dn = ("NHWC", "HWIO", "NHWC")
  hidden = int(round(cin * expand_ratio))
  y = x
  if expand_ratio != 1:
    y = lax.conv_general_dilated(
        y.astype(jnp.bfloat16), p["w1_hwio"].astype(jnp.bfloat16), (1, 1),
        "VALID", dimension_numbers=dn, preferred_element_type=jnp.float32)
    y = jnp.clip(y * p["s1"] + p["b1"], 0.0, 6.0)
  y = lax.conv_general_dilated(y, p["wdw_hwio"], (stride, stride),
                               ((1, 1), (1, 1)), dimension_numbers=dn,
                               feature_group_count=hidden)
  y = jnp.clip(y * p["s2"] + p["b2"], 0.0, 6.0)
  y = lax.conv_general_dilated(
      y.astype(jnp.bfloat16), p["w3_hwio"].astype(jnp.bfloat16), (1, 1),
      "VALID", dimension_numbers=dn, preferred_element_type=jnp.float32)
  y = y * p["s3"] + p["b3"]
  if stride == 1 and cin == cout:
    y = y + x
  return jnp.transpose(y, (0, 3, 1, 2))


if __name__ == "__main__":
  key = jax.random.PRNGKey(0)
  N, H, W = 2, 16, 16

  configs = [
      # (Cin, Cout, stride, expand_ratio)
      (4, 4, 1, 6),    # residual path (use_res_connect == True)
      (8, 4, 1, 1),    # expand_ratio == 1 (no expand conv), no residual
  ]

  for i, (cin, cout, stride, er) in enumerate(configs):
    kx, kp = jax.random.split(jax.random.fold_in(key, i))
    x = jax.random.normal(kx, (N, cin, H, W), jnp.float32)
    params = init_params(kp, cin, cout, er)

    fwd, hidden, use_res = make_inverted_residual(cin, cout, stride, er, H, W)
    out = jax.block_until_ready(fwd(x, params))
    ref = jax.block_until_ready(
        reference_forward(x, params, stride, er, cin, cout))

    assert out.shape == ref.shape == (N, cout, H // stride, W // stride), \
        (out.shape, ref.shape)
    max_err = float(jnp.max(jnp.abs(out - ref)))
    assert max_err < 5e-3, f"config {i}: max abs err {max_err}"

  print("KERNEL_OK")
</pallas_src>

<mosaic_0001>
module attributes {stable_mosaic.version = 11 : i64} {
  func.func @_inverted_residual_kernel(%arg0: i32, %arg1: i32, %arg2: memref<1x4x128xf32, #tpu.memory_space<vmem>>, %arg3: memref<1x4x128xf32, #tpu.memory_space<vmem>>, %arg4: memref<1x4x128xf32, #tpu.memory_space<vmem>>, %arg5: memref<4x128xbf16, #tpu.memory_space<vmem>>, %arg6: memref<1x128xf32, #tpu.memory_space<vmem>>, %arg7: memref<1x128xf32, #tpu.memory_space<vmem>>, %arg8: memref<9x128xf32, #tpu.memory_space<vmem>>, %arg9: memref<1x128xf32, #tpu.memory_space<vmem>>, %arg10: memref<1x128xf32, #tpu.memory_space<vmem>>, %arg11: memref<128x4xbf16, #tpu.memory_space<vmem>>, %arg12: memref<1x4xf32, #tpu.memory_space<vmem>>, %arg13: memref<1x4xf32, #tpu.memory_space<vmem>>, %arg14: memref<1x4x128xf32, #tpu.memory_space<vmem>>) attributes {dimension_semantics = [#tpu.dimension_semantics<parallel>, #tpu.dimension_semantics<parallel>], iteration_bounds = array<i64: 2, 2>, scalar_prefetch = 0 : i64, scratch_operands = 0 : i64, tpu.core_type = #tpu.core_type<tc>, window_params = [{transform_indices = @transform_0, window_bounds = array<i64: 1, 4, 128>}, {transform_indices = @transform_1, window_bounds = array<i64: 1, 4, 128>}, {transform_indices = @transform_2, window_bounds = array<i64: 1, 4, 128>}, {pipeline_mode = #tpu.pipeline_mode<synchronous>, transform_indices = @transform_3, window_bounds = array<i64: 4, 128>}, {pipeline_mode = #tpu.pipeline_mode<synchronous>, transform_indices = @transform_4, window_bounds = array<i64: 1, 128>}, {pipeline_mode = #tpu.pipeline_mode<synchronous>, transform_indices = @transform_5, window_bounds = array<i64: 1, 128>}, {pipeline_mode = #tpu.pipeline_mode<synchronous>, transform_indices = @transform_6, window_bounds = array<i64: 9, 128>}, {pipeline_mode = #tpu.pipeline_mode<synchronous>, transform_indices = @transform_7, window_bounds = array<i64: 1, 128>}, {pipeline_mode = #tpu.pipeline_mode<synchronous>, transform_indices = @transform_8, window_bounds = array<i64: 1, 128>}, {pipeline_mode = #tpu.pipeline_mode<synchronous>, transform_indices = @transform_9, window_bounds = array<i64: 128, 4>}, {pipeline_mode = #tpu.pipeline_mode<synchronous>, transform_indices = @transform_10, window_bounds = array<i64: 1, 4>}, {pipeline_mode = #tpu.pipeline_mode<synchronous>, transform_indices = @transform_11, window_bounds = array<i64: 1, 4>}, {transform_indices = @transform_12, window_bounds = array<i64: 1, 4, 128>}]} {
    %c0 = arith.constant 0 : index
    %c0_0 = arith.constant 0 : index
    %c0_1 = arith.constant 0 : index
    %0 = vector.load %arg3[%c0, %c0_0, %c0_1] : memref<1x4x128xf32, #tpu.memory_space<vmem>>, vector<1x4x128xf32>
    %1 = vector.shape_cast %0 : vector<1x4x128xf32> to vector<4x128xf32>
    %2 = vector.extract_strided_slice %1 {offsets = [0, 112], sizes = [4, 16], strides = [1, 1]} : vector<4x128xf32> to vector<4x16xf32>
    %3 = tpu.transpose %2, [1, 0] : vector<4x16xf32> -> vector<16x4xf32>
    %c0_2 = arith.constant 0 : index
    %c0_3 = arith.constant 0 : index
    %c0_4 = arith.constant 0 : index
    %4 = vector.load %arg2[%c0_2, %c0_3, %c0_4] : memref<1x4x128xf32, #tpu.memory_space<vmem>>, vector<1x4x128xf32>
    %5 = vector.shape_cast %4 : vector<1x4x128xf32> to vector<4x128xf32>
    %6 = tpu.transpose %5, [1, 0] : vector<4x128xf32> -> vector<128x4xf32>
    %c0_5 = arith.constant 0 : index
    %c0_6 = arith.constant 0 : index
    %c0_7 = arith.constant 0 : index
    %7 = vector.load %arg4[%c0_5, %c0_6, %c0_7] : memref<1x4x128xf32, #tpu.memory_space<vmem>>, vector<1x4x128xf32>
    %8 = vector.shape_cast %7 : vector<1x4x128xf32> to vector<4x128xf32>
    %9 = vector.extract_strided_slice %8 {offsets = [0, 0], sizes = [4, 16], strides = [1, 1]} : vector<4x128xf32> to vector<4x16xf32>
    %10 = tpu.transpose %9, [1, 0] : vector<4x16xf32> -> vector<16x4xf32>
    %11 = tpu.concatenate %3, %6, %10 in 0 : vector<16x4xf32>, vector<128x4xf32>, vector<16x4xf32> -> vector<160x4xf32>
    %12 = arith.truncf %11 : vector<160x4xf32> to vector<160x4xbf16>
    %c0_8 = arith.constant 0 : index
    %c0_9 = arith.constant 0 : index
    %13 = vector.load %arg5[%c0_8, %c0_9] : memref<4x128xbf16, #tpu.memory_space<vmem>>, vector<4x128xbf16>
    %cst = arith.constant dense<0.000000e+00> : vector<160x128xf32>
    %14 = tpu.matmul %12, %13, %cst {dimension_numbers = #tpu.dot_dimension_numbers<[1], [0], [0], [1], [0, 0, 1, 1], [], []>} : vector<160x4xbf16>, vector<4x128xbf16>, vector<160x128xf32> -> vector<160x128xf32>
    %c0_10 = arith.constant 0 : index
    %c0_11 = arith.constant 0 : index
    %15 = vector.load %arg6[%c0_10, %c0_11] : memref<1x128xf32, #tpu.memory_space<vmem>>, vector<1x128xf32>
    %16 = vector.broadcast %15 : vector<1x128xf32> to vector<160x128xf32>
    %17 = arith.mulf %14, %16 : vector<160x128xf32>
    %c0_12 = arith.constant 0 : index
    %c0_13 = arith.constant 0 : index
    %18 = vector.load %arg7[%c0_12, %c0_13] : memref<1x128xf32, #tpu.memory_space<vmem>>, vector<1x128xf32>
    %19 = vector.broadcast %18 : vector<1x128xf32> to vector<160x128xf32>
    %20 = arith.addf %17, %19 : vector<160x128xf32>
    %cst_14 = arith.constant 0.000000e+00 : f32
    %cst_15 = arith.constant 6.000000e+00 : f32
    %21 = vector.broadcast %cst_14 : f32 to vector<160x128xf32>
    %22 = arith.maximumf %21, %20 : vector<160x128xf32>
    %23 = vector.broadcast %cst_15 : f32 to vector<160x128xf32>
    %24 = arith.minimumf %23, %22 : vector<160x128xf32>
    %25 = tpu.iota {dimensions = array<i32: 0>} : vector<160x1xi32>
    %c16_i32 = arith.constant 16 : i32
    %26 = vector.broadcast %c16_i32 : i32 to vector<160x1xi32>
    %27 = arith.cmpi slt, %25, %26 : vector<160x1xi32>
    %c0_i32 = arith.constant 0 : i32
    %28 = arith.cmpi sgt, %arg1, %c0_i32 : i32
    %29 = arith.extui %28 : i1 to i32
    %30 = arith.sitofp %29 : i32 to f32
    %cst_16 = arith.constant 1.000000e+00 : f32
    %31 = vector.broadcast %30 : f32 to vector<160x1xf32>
    %32 = vector.broadcast %cst_16 : f32 to vector<160x1xf32>
    %33 = arith.select %27, %31, %32 : vector<160x1xi1>, vector<160x1xf32>
    %c144_i32 = arith.constant 144 : i32
    %34 = vector.broadcast %c144_i32 : i32 to vector<160x1xi32>
    %35 = arith.cmpi sge, %25, %34 : vector<160x1xi32>
    %c1_i32 = arith.constant 1 : i32
    %36 = arith.cmpi slt, %arg1, %c1_i32 : i32
    %37 = arith.extui %36 : i1 to i32
    %38 = arith.sitofp %37 : i32 to f32
    %cst_17 = arith.constant 1.000000e+00 : f32
    %39 = vector.broadcast %38 : f32 to vector<160x1xf32>
    %40 = vector.broadcast %cst_17 : f32 to vector<160x1xf32>
    %41 = arith.select %35, %39, %40 : vector<160x1xi1>, vector<160x1xf32>
    %42 = arith.mulf %33, %41 : vector<160x1xf32>
    %43 = vector.broadcast %42 : vector<160x1xf32> to vector<160x128xf32>
    %44 = arith.mulf %24, %43 : vector<160x128xf32>
    %c0_18 = arith.constant 0 : index
    %c0_19 = arith.constant 0 : index
    %45 = vector.load %arg8[%c0_18, %c0_19] : memref<9x128xf32, #tpu.memory_space<vmem>>, vector<9x128xf32>
    %cst_20 = arith.constant 0.000000e+00 : f32
    %46 = vector.broadcast %cst_20 : f32 to vector<1x128xf32>
    %c16_i32_21 = arith.constant 16 : i32
    %c0_i32_22 = arith.constant 0 : i32
    %47 = arith.cmpi eq, %c16_i32_21, %c0_i32_22 : i32
    %c1_i32_23 = arith.constant 1 : i32
    %48 = arith.select %47, %c1_i32_23, %c16_i32_21 : i32
    %49 = vector.broadcast %48 : i32 to vector<160x1xi32>
    %50 = arith.remsi %25, %49 : vector<160x1xi32>
    %c0_i32_24 = arith.constant 0 : i32
    %51 = vector.broadcast %c0_i32_24 : i32 to vector<160x1xi32>
    %52 = arith.cmpi ne, %50, %51 : vector<160x1xi32>
    %c0_i32_25 = arith.constant 0 : i32
    %53 = vector.broadcast %c0_i32_25 : i32 to vector<160x1xi32>
    %54 = arith.cmpi slt, %50, %53 : vector<160x1xi32>
    %c0_i32_26 = arith.constant 0 : i32
    %55 = arith.cmpi slt, %48, %c0_i32_26 : i32
    %56 = vector.broadcast %55 : i1 to vector<160x1xi1>
    %57 = vector.broadcast %56 : vector<160x1xi1> to vector<160x1xi1>
    %58 = arith.xori %54, %57 : vector<160x1xi1>
    %59 = arith.andi %58, %52 : vector<160x1xi1>
    %60 = vector.broadcast %48 : i32 to vector<160x1xi32>
    %61 = arith.addi %50, %60 : vector<160x1xi32>
    %62 = arith.select %59, %61, %50 : vector<160x1xi1>, vector<160x1xi32>
    %c0_i32_27 = arith.constant 0 : i32
    %63 = vector.broadcast %c0_i32_27 : i32 to vector<160x1xi32>
    %64 = arith.cmpi eq, %62, %63 : vector<160x1xi32>
    %65 = vector.extract_strided_slice %44 {offsets = [0, 0], sizes = [159, 128], strides = [1, 1]} : vector<160x128xf32> to vector<159x128xf32>
    %66 = tpu.concatenate %46, %65 in 0 : vector<1x128xf32>, vector<159x128xf32> -> vector<160x128xf32>
    %cst_28 = arith.constant 0.000000e+00 : f32
    %67 = vector.shape_cast %64 : vector<160x1xi1> to vector<160x1xi1>
    %68 = vector.broadcast %67 : vector<160x1xi1> to vector<160x128xi1>
    %69 = vector.broadcast %cst_28 : f32 to vector<160x128xf32>
    %70 = arith.select %68, %69, %66 : vector<160x128xi1>, vector<160x128xf32>
    %c15_i32 = arith.constant 15 : i32
    %71 = vector.broadcast %c15_i32 : i32 to vector<160x1xi32>
    %72 = arith.cmpi eq, %62, %71 : vector<160x1xi32>
    %73 = vector.extract_strided_slice %44 {offsets = [1, 0], sizes = [159, 128], strides = [1, 1]} : vector<160x128xf32> to vector<159x128xf32>
    %74 = tpu.concatenate %73, %46 in 0 : vector<159x128xf32>, vector<1x128xf32> -> vector<160x128xf32>
    %cst_29 = arith.constant 0.000000e+00 : f32
    %75 = vector.shape_cast %72 : vector<160x1xi1> to vector<160x1xi1>
    %76 = vector.broadcast %75 : vector<160x1xi1> to vector<160x128xi1>
    %77 = vector.broadcast %cst_29 : f32 to vector<160x128xf32>
    %78 = arith.select %76, %77, %74 : vector<160x128xi1>, vector<160x128xf32>
    %cst_30 = arith.constant 0.000000e+00 : f32
    %79 = vector.broadcast %cst_30 : f32 to vector<128x128xf32>
    %80 = vector.extract_strided_slice %70 {offsets = [0, 0], sizes = [128, 128], strides = [1, 1]} : vector<160x128xf32> to vector<128x128xf32>
    %81 = vector.extract_strided_slice %45 {offsets = [0, 0], sizes = [1, 128], strides = [1, 1]} : vector<9x128xf32> to vector<1x128xf32>
    %82 = vector.shape_cast %81 : vector<1x128xf32> to vector<128xf32>
    %83 = vector.shape_cast %82 : vector<128xf32> to vector<1x128xf32>
    %84 = vector.broadcast %83 : vector<1x128xf32> to vector<128x128xf32>
    %85 = arith.mulf %80, %84 : vector<128x128xf32>
    %86 = arith.addf %79, %85 : vector<128x128xf32>
    %87 = vector.extract_strided_slice %44 {offsets = [0, 0], sizes = [128, 128], strides = [1, 1]} : vector<160x128xf32> to vector<128x128xf32>
    %88 = vector.extract_strided_slice %45 {offsets = [1, 0], sizes = [1, 128], strides = [1, 1]} : vector<9x128xf32> to vector<1x128xf32>
    %89 = vector.shape_cast %88 : vector<1x128xf32> to vector<128xf32>
    %90 = vector.shape_cast %89 : vector<128xf32> to vector<1x128xf32>
    %91 = vector.broadcast %90 : vector<1x128xf32> to vector<128x128xf32>
    %92 = arith.mulf %87, %91 : vector<128x128xf32>
    %93 = arith.addf %86, %92 : vector<128x128xf32>
    %94 = vector.extract_strided_slice %78 {offsets = [0, 0], sizes = [128, 128], strides = [1, 1]} : vector<160x128xf32> to vector<128x128xf32>
    %95 = vector.extract_strided_slice %45 {offsets = [2, 0], sizes = [1, 128], strides = [1, 1]} : vector<9x128xf32> to vector<1x128xf32>
    %96 = vector.shape_cast %95 : vector<1x128xf32> to vector<128xf32>
    %97 = vector.shape_cast %96 : vector<128xf32> to vector<1x128xf32>
    %98 = vector.broadcast %97 : vector<1x128xf32> to vector<128x128xf32>
    %99 = arith.mulf %94, %98 : vector<128x128xf32>
    %100 = arith.addf %93, %99 : vector<128x128xf32>
    %101 = vector.extract_strided_slice %70 {offsets = [16, 0], sizes = [128, 128], strides = [1, 1]} : vector<160x128xf32> to vector<128x128xf32>
    %102 = vector.extract_strided_slice %45 {offsets = [3, 0], sizes = [1, 128], strides = [1, 1]} : vector<9x128xf32> to vector<1x128xf32>
    %103 = vector.shape_cast %102 : vector<1x128xf32> to vector<128xf32>
    %104 = vector.shape_cast %103 : vector<128xf32> to vector<1x128xf32>
    %105 = vector.broadcast %104 : vector<1x128xf32> to vector<128x128xf32>
    %106 = arith.mulf %101, %105 : vector<128x128xf32>
    %107 = arith.addf %100, %106 : vector<128x128xf32>
    %108 = vector.extract_strided_slice %44 {offsets = [16, 0], sizes = [128, 128], strides = [1, 1]} : vector<160x128xf32> to vector<128x128xf32>
    %109 = vector.extract_strided_slice %45 {offsets = [4, 0], sizes = [1, 128], strides = [1, 1]} : vector<9x128xf32> to vector<1x128xf32>
    %110 = vector.shape_cast %109 : vector<1x128xf32> to vector<128xf32>
    %111 = vector.shape_cast %110 : vector<128xf32> to vector<1x128xf32>
    %112 = vector.broadcast %111 : vector<1x128xf32> to vector<128x128xf32>
    %113 = arith.mulf %108, %112 : vector<128x128xf32>
    %114 = arith.addf %107, %113 : vector<128x128xf32>
    %115 = vector.extract_strided_slice %78 {offsets = [16, 0], sizes = [128, 128], strides = [1, 1]} : vector<160x128xf32> to vector<128x128xf32>
    %116 = vector.extract_strided_slice %45 {offsets = [5, 0], sizes = [1, 128], strides = [1, 1]} : vector<9x128xf32> to vector<1x128xf32>
    %117 = vector.shape_cast %116 : vector<1x128xf32> to vector<128xf32>
    %118 = vector.shape_cast %117 : vector<128xf32> to vector<1x128xf32>
    %119 = vector.broadcast %118 : vector<1x128xf32> to vector<128x128xf32>
    %120 = arith.mulf %115, %119 : vector<128x128xf32>
    %121 = arith.addf %114, %120 : vector<128x128xf32>
    %122 = vector.extract_strided_slice %70 {offsets = [32, 0], sizes = [128, 128], strides = [1, 1]} : vector<160x128xf32> to vector<128x128xf32>
    %123 = vector.extract_strided_slice %45 {offsets = [6, 0], sizes = [1, 128], strides = [1, 1]} : vector<9x128xf32> to vector<1x128xf32>
    %124 = vector.shape_cast %123 : vector<1x128xf32> to vector<128xf32>
    %125 = vector.shape_cast %124 : vector<128xf32> to vector<1x128xf32>
    %126 = vector.broadcast %125 : vector<1x128xf32> to vector<128x128xf32>
    %127 = arith.mulf %122, %126 : vector<128x128xf32>
    %128 = arith.addf %121, %127 : vector<128x128xf32>
    %129 = vector.extract_strided_slice %44 {offsets = [32, 0], sizes = [128, 128], strides = [1, 1]} : vector<160x128xf32> to vector<128x128xf32>
    %130 = vector.extract_strided_slice %45 {offsets = [7, 0], sizes = [1, 128], strides = [1, 1]} : vector<9x128xf32> to vector<1x128xf32>
    %131 = vector.shape_cast %130 : vector<1x128xf32> to vector<128xf32>
    %132 = vector.shape_cast %131 : vector<128xf32> to vector<1x128xf32>
    %133 = vector.broadcast %132 : vector<1x128xf32> to vector<128x128xf32>
    %134 = arith.mulf %129, %133 : vector<128x128xf32>
    %135 = arith.addf %128, %134 : vector<128x128xf32>
    %136 = vector.extract_strided_slice %78 {offsets = [32, 0], sizes = [128, 128], strides = [1, 1]} : vector<160x128xf32> to vector<128x128xf32>
    %137 = vector.extract_strided_slice %45 {offsets = [8, 0], sizes = [1, 128], strides = [1, 1]} : vector<9x128xf32> to vector<1x128xf32>
    %138 = vector.shape_cast %137 : vector<1x128xf32> to vector<128xf32>
    %139 = vector.shape_cast %138 : vector<128xf32> to vector<1x128xf32>
    %140 = vector.broadcast %139 : vector<1x128xf32> to vector<128x128xf32>
    %141 = arith.mulf %136, %140 : vector<128x128xf32>
    %142 = arith.addf %135, %141 : vector<128x128xf32>
    %c0_31 = arith.constant 0 : index
    %c0_32 = arith.constant 0 : index
    %143 = vector.load %arg9[%c0_31, %c0_32] : memref<1x128xf32, #tpu.memory_space<vmem>>, vector<1x128xf32>
    %144 = vector.broadcast %143 : vector<1x128xf32> to vector<128x128xf32>
    %145 = arith.mulf %142, %144 : vector<128x128xf32>
    %c0_33 = arith.constant 0 : index
    %c0_34 = arith.constant 0 : index
    %146 = vector.load %arg10[%c0_33, %c0_34] : memref<1x128xf32, #tpu.memory_space<vmem>>, vector<1x128xf32>
    %147 = vector.broadcast %146 : vector<1x128xf32> to vector<128x128xf32>
    %148 = arith.addf %145, %147 : vector<128x128xf32>
    %cst_35 = arith.constant 0.000000e+00 : f32
    %cst_36 = arith.constant 6.000000e+00 : f32
    %149 = vector.broadcast %cst_35 : f32 to vector<128x128xf32>
    %150 = arith.maximumf %149, %148 : vector<128x128xf32>
    %151 = vector.broadcast %cst_36 : f32 to vector<128x128xf32>
    %152 = arith.minimumf %151, %150 : vector<128x128xf32>
    %153 = arith.truncf %152 : vector<128x128xf32> to vector<128x128xbf16>
    %c0_37 = arith.constant 0 : index
    %c0_38 = arith.constant 0 : index
    %154 = vector.load %arg11[%c0_37, %c0_38] : memref<128x4xbf16, #tpu.memory_space<vmem>>, vector<128x4xbf16>
    %cst_39 = arith.constant dense<0.000000e+00> : vector<128x4xf32>
    %155 = tpu.matmul %153, %154, %cst_39 {dimension_numbers = #tpu.dot_dimension_numbers<[1], [0], [0], [1], [0, 0, 1, 1], [], []>} : vector<128x128xbf16>, vector<128x4xbf16>, vector<128x4xf32> -> vector<128x4xf32>
    %c0_40 = arith.constant 0 : index
    %c0_41 = arith.constant 0 : index
    %156 = vector.load %arg12[%c0_40, %c0_41] : memref<1x4xf32, #tpu.memory_space<vmem>>, vector<1x4xf32>
    %157 = vector.broadcast %156 : vector<1x4xf32> to vector<128x4xf32>
    %158 = arith.mulf %155, %157 : vector<128x4xf32>
    %c0_42 = arith.constant 0 : index
    %c0_43 = arith.constant 0 : index
    %159 = vector.load %arg13[%c0_42, %c0_43] : memref<1x4xf32, #tpu.memory_space<vmem>>, vector<1x4xf32>
    %160 = vector.broadcast %159 : vector<1x4xf32> to vector<128x4xf32>
    %161 = arith.addf %158, %160 : vector<128x4xf32>
    %162 = tpu.transpose %161, [1, 0] : vector<128x4xf32> -> vector<4x128xf32>
    %c0_44 = arith.constant 0 : index
    %c0_45 = arith.constant 0 : index
    %c0_46 = arith.constant 0 : index
    %163 = vector.load %arg2[%c0_44, %c0_45, %c0_46] : memref<1x4x128xf32, #tpu.memory_space<vmem>>, vector<1x4x128xf32>
    %164 = vector.shape_cast %163 : vector<1x4x128xf32> to vector<4x128xf32>
    %165 = arith.addf %162, %164 : vector<4x128xf32>
    %c0_47 = arith.constant 0 : index
    %c0_48 = arith.constant 0 : index
    %c0_49 = arith.constant 0 : index
    %166 = vector.load %arg14[%c0_47, %c0_48, %c0_49] : memref<1x4x128xf32, #tpu.memory_space<vmem>>, vector<1x4x128xf32>
    %167 = vector.shape_cast %166 : vector<1x4x128xf32> to vector<4x128xf32>
    %168 = vector.shape_cast %165 : vector<4x128xf32> to vector<1x4x128xf32>
    tpu.vector_store %arg14[%c0_47, %c0_48, %c0_49], %168 {strides = array<i32>} : memref<1x4x128xf32, #tpu.memory_space<vmem>>, vector<1x4x128xf32>,
    return
  }
  func.func @transform_0(%arg0: i32, %arg1: i32) -> (i32, i32, i32) {
    %c0_i32 = arith.constant 0 : i32
    %c0_i32_0 = arith.constant 0 : i32
    return %arg0, %c0_i32, %arg1 : i32, i32, i32
  }
  func.func @transform_1(%arg0: i32, %arg1: i32) -> (i32, i32, i32) {
    %c1_i32 = arith.constant 1 : i32
    %0 = arith.subi %arg1, %c1_i32 : i32
    %c0_i32 = arith.constant 0 : i32
    %1 = arith.maxsi %0, %c0_i32 : i32
    %c0_i32_0 = arith.constant 0 : i32
    %c0_i32_1 = arith.constant 0 : i32
    return %arg0, %c0_i32_0, %1 : i32, i32, i32
  }
  func.func @transform_2(%arg0: i32, %arg1: i32) -> (i32, i32, i32) {
    %c1_i32 = arith.constant 1 : i32
    %0 = arith.addi %arg1, %c1_i32 : i32
    %c1_i32_0 = arith.constant 1 : i32
    %1 = arith.minsi %0, %c1_i32_0 : i32
    %c0_i32 = arith.constant 0 : i32
    %c0_i32_1 = arith.constant 0 : i32
    return %arg0, %c0_i32, %1 : i32, i32, i32
  }
  func.func @transform_3(%arg0: i32, %arg1: i32) -> (i32, i32) {
    %c0_i32 = arith.constant 0 : i32
    %c0_i32_0 = arith.constant 0 : i32
    %c0_i32_1 = arith.constant 0 : i32
    return %c0_i32, %c0_i32_0 : i32, i32
  }
  func.func @transform_4(%arg0: i32, %arg1: i32) -> (i32, i32) {
    %c0_i32 = arith.constant 0 : i32
    %c0_i32_0 = arith.constant 0 : i32
    %c0_i32_1 = arith.constant 0 : i32
    return %c0_i32, %c0_i32_0 : i32, i32
  }
  func.func @transform_5(%arg0: i32, %arg1: i32) -> (i32, i32) {
    %c0_i32 = arith.constant 0 : i32
    %c0_i32_0 = arith.constant 0 : i32
    %c0_i32_1 = arith.constant 0 : i32
    return %c0_i32, %c0_i32_0 : i32, i32
  }
  func.func @transform_6(%arg0: i32, %arg1: i32) -> (i32, i32) {
    %c0_i32 = arith.constant 0 : i32
    %c0_i32_0 = arith.constant 0 : i32
    %c0_i32_1 = arith.constant 0 : i32
    return %c0_i32, %c0_i32_0 : i32, i32
  }
  func.func @transform_7(%arg0: i32, %arg1: i32) -> (i32, i32) {
    %c0_i32 = arith.constant 0 : i32
    %c0_i32_0 = arith.constant 0 : i32
    %c0_i32_1 = arith.constant 0 : i32
    return %c0_i32, %c0_i32_0 : i32, i32
  }
  func.func @transform_8(%arg0: i32, %arg1: i32) -> (i32, i32) {
    %c0_i32 = arith.constant 0 : i32
    %c0_i32_0 = arith.constant 0 : i32
    %c0_i32_1 = arith.constant 0 : i32
    return %c0_i32, %c0_i32_0 : i32, i32
  }
  func.func @transform_9(%arg0: i32, %arg1: i32) -> (i32, i32) {
    %c0_i32 = arith.constant 0 : i32
    %c0_i32_0 = arith.constant 0 : i32
    %c0_i32_1 = arith.constant 0 : i32
    return %c0_i32, %c0_i32_0 : i32, i32
  }
  func.func @transform_10(%arg0: i32, %arg1: i32) -> (i32, i32) {
    %c0_i32 = arith.constant 0 : i32
    %c0_i32_0 = arith.constant 0 : i32
    %c0_i32_1 = arith.constant 0 : i32
    return %c0_i32, %c0_i32_0 : i32, i32
  }
  func.func @transform_11(%arg0: i32, %arg1: i32) -> (i32, i32) {
    %c0_i32 = arith.constant 0 : i32
    %c0_i32_0 = arith.constant 0 : i32
    %c0_i32_1 = arith.constant 0 : i32
    return %c0_i32, %c0_i32_0 : i32, i32
  }
  func.func @transform_12(%arg0: i32, %arg1: i32) -> (i32, i32, i32) {
    %c0_i32 = arith.constant 0 : i32
    %c0_i32_0 = arith.constant 0 : i32
    return %arg0, %c0_i32, %arg1 : i32, i32, i32
  }
}

</mosaic_0001>

<bundles_post_ra>
// kernel: squeeze.4
= control target key start
LH: loop header
LB: loop body
LE: loop exit
PB: predicated region body
PF: predicated region fallthrough
CT: control target
= control target key end

     0   :  { %vm17_vm0 = vcmask 195584   ;;  %s62_s0 = inlined_call_operand.vmem [shape: f32[3,3,24], index: 0, kind: input, shape index: {}]   ;;  %s63_s1 = inlined_call_operand.vmem [shape: f32[9,24], index: 1, kind: output, shape index: {}]  }
   0x1   :  { %v30_v0 = vld [vmem:[%s62_s0 + $0x8] sm:$0xf]  ;;  %v31_v1 = vld [vmem:[%s62_s0 + $0x4] sm:$0xf]  ;;  %v14_v2 = vld [vmem:[%s62_s0] sm:$0xf] }
   0x2   :  { %9 = vst [vmem:[#allocation0] sm:$0xf] %v30_v0  ;;  %13 = vst [vmem:[#allocation0 + $0x10] sm:$0xf] %v31_v1 }
   0x3   :  { %15 = vst [vmem:[#allocation0 + $0x8] sm:$0xf] %v14_v2 }
   0x9   :  { %v20_v4 = vld [vmem:[#allocation0 + $0x10] sm:$0x7]   ;;  %v25_v5 = vld [vmem:[#allocation0] sm:$0x7]  }
   0xa   :  { %v16_v3 = vld [vmem:[#allocation0 + $0x8] sm:$0x7]   ;;  %32 = vst.msk [vmem:[%s63_s1 + $0x3] sm:$0x7] %vm17_vm0, %v20_v4   ;;  %33 = vst.msk [vmem:[%s63_s1 + $0x6] sm:$0x7] %vm17_vm0, %v25_v5  }
   0xb   :  { %18 = vst.msk [vmem:[%s63_s1] sm:$0x7] %vm17_vm0, %v16_v3  }

// kernel: fwd.1
= control target key start
LH: loop header
LB: loop body
LE: loop exit
PB: predicated region body
PF: predicated region fallthrough
CT: control target
= control target key end

     0   :  { %s2680_s21 = smov 0   ;;  %s2682_s22 = smov 0   ;;  %s3802_s0 = inlined_call_operand.vmem [shape: f32[2,4,256], index: 0, kind: input, shape index: {}, may-alias: {0,1,2}]   ;;  %s3803_s1 = inlined_call_operand.vmem [shape: f32[2,4,256], index: 1, kind: input, shape index: {}, may-alias: {0,1,2}]   ;;  %s3804_s2 = inlined_call_operand.vmem [shape: f32[2,4,256], index: 2, kind: input, shape index: {}, may-alias: {0,1,2}]   ;;  %s3805_s3 = inlined_call_operand.vmem [shape: bf16[4,128], index: 3, kind: input, shape index: {}]   ;;  %s3806_s4 = inlined_call_operand.vmem [shape: f32[1,128], index: 4, kind: input, shape index: {}]   ;;  %s3807_s5 = inlined_call_operand.vmem [shape: f32[1,128], index: 5, kind: input, shape index: {}]   ;;  %s3808_s6 = inlined_call_operand.vmem [shape: f32[9,128], index: 6, kind: input, shape index: {}]   ;;  %s3809_s7 = inlined_call_operand.vmem [shape: f32[1,128], index: 7, kind: input, shape index: {}]   ;;  %s3810_s8 = inlined_call_operand.vmem [shape: f32[1,128], index: 8, kind: input, shape index: {}]   ;;  %s3811_s9 = inlined_call_operand.vmem [shape: bf16[128,4], index: 9, kind: input, shape index: {}]   ;;  %s3812_s10 = inlined_call_operand.vmem [shape: f32[1,4], index: 10, kind: input, shape index: {}]   ;;  %s3813_s11 = inlined_call_operand.vmem [shape: f32[1,4], index: 11, kind: input, shape index: {}]   ;;  %s3814_s12 = inlined_call_operand.vmem [shape: f32[2,4,256], index: 12, kind: output, shape index: {}]  }
   0x1   :  { %s2684_s23 = smov 0   ;;  %s2686_s24 = smov 0  }
   0x2   :  { %s2688_s25 = smov 0  }
   0x3 LB: > { %s31_s26 = sadd.s32 1, %s2604_s23  ;;  %s34_s27 = sadd.s32 1, %s2608_s24  ;;  %s2612_s25 = sphi %s2688_s25, %s22_s25   ;;  %s2608_s24 = sphi %s2686_s24, %s4031_s24   ;;  %s2604_s23 = sphi %s2684_s23, %s4030_s23   ;;  %s2600_s22 = sphi %s2682_s22, %s4029_s22   ;;  %s2596_s21 = sphi %s2680_s21, %s4028_s21  }
   0x4   : > { %p32_p0 = scmp.ge.s32.totalorder %s31_s26, 2  ;;  %p2378_p1 = scmp.ge.s32.totalorder %s2612_s25, 1 }
   0x5   : > { %p435_p2 = scmp.lt.s32.totalorder %s2612_s25, 5 }
   0x6   : > { %s4033_s26 = smov (%p32_p0, %s31_s26), 0  ;;  %s4035_s27 = smov (!%p32_p0, %s34_s27), %s2608_s24 }
   0x7   : > { %3849 = sst [smem:[#allocation2_spill]] %s4033_s26  ;;  %p436_p3 = pnand %p2378_p1, %p435_p2 }
   0x8   : > { %p36_p4 = scmp.ge.s32.totalorder %s4035_s27, 2 }
   0x9   : > { %439 = sbr.rel (%p436_p3) target bundleno = 908 (0x38c), region = 68 }
   0xa   : > { %s4037_s27 = smov (%p36_p4, %s4035_s27), 0 }
   0xb   : > { %3850 = sst [smem:[#allocation3_spill]] %s4037_s27 }
   0xe   : > { %p505_p5 = scmp.lt.s32.totalorder %s2600_s22, 1  ;;  %s2381_s28 = sadd.s32 4294967295, %s2596_s21  ;;  %v663_v3 = vld [vmem:[%s3805_s3] sm:$0x3]  ;;  %vm695_vm0 = vcmask 1041408   ;;  %vm664_vm1 = vcmask 31744   ;;  %v906_v44 = vlaneseq }
   0xf   : > { %p514_p6 = scmp.gt.s32.totalorder %s2381_s28, 0  ;;  %p2382_p7 = scmp.lt.s32.totalorder %s2381_s28, 1  ;;  %2522 = vmatprep.subr.msk.bf16.mxu0 %vm695_vm0, %v663_v3  ;;  %v697_v5 = vsel %vm695_vm0, %v663_v3, 0  ;;  %v2565_v36 = vld [vmem:[%s3811_s9 + $0x38] sm:$0xff]   ;;  %v2566_v37 = vld [vmem:[%s3811_s9 + $0x30] sm:$0xff]   ;;  %v2567_v38 = vld [vmem:[%s3811_s9 + $0x28] sm:$0xff]  }
  0x10   : > { %s4039_s22 = smov (!%p505_p5, %s2600_s22), 1  ;;  %p507_p8 = scmp.lt.s32.totalorder %s2596_s21, 1  ;;  %2453 = vmatpush3.bf16.msra.mxu0 %v697_v5  ;;  %2506 = vmatprep.subr.bf16.mxu1 %v2565_v36  ;;  %v2568_v39 = vld [vmem:[%s3811_s9 + $0x20] sm:$0xff]   ;;  %v2569_v40 = vld [vmem:[%s3811_s9 + $0x18] sm:$0xff]   ;;  %v2570_v41 = vld [vmem:[%s3811_s9 + $0x10] sm:$0xff]   ;;  %v2771_v45 = vshrl.u32 %v906_v44, 7 }
  0x11   : > { %s4041_s28 = smov (!%p514_p6, %s2381_s28), 0  ;;  %s2379_s29 = sshll.u32 %s4039_s22, 1  ;;  %2474 = vmatprep.subr.bf16.mxu0 %v2565_v36  ;;  %2514 = vmatpush3.bf16.msra.mxu1 %v2565_v36  ;;  %v2571_v42 = vld [vmem:[%s3811_s9 + $0x8] sm:$0xff]   ;;  %v2572_v43 = vld [vmem:[%s3811_s9] sm:$0xff]   ;;  %vm1337_vm2 = vcmask 1040384   ;;  %vm1478_vm4 = vcmask 1046528  }
  0x12   : > { %s4043_s28 = smov (!%p2382_p7, %s4041_s28), 1  ;;  %s2614_s18 = smov 16   ;;  %2507 = vmatprep.subr.bf16.mxu1 %v2566_v37  ;;  %v1637_v46 = vsub.s32 1, %v2771_v45  ;;  %v1745_v47 = vsub.s32 4, %v2771_v45  ;;  %v1055_v48 = vld [vmem:[%s3808_s6] sm:$0xff]  ;;  %v1601_v51 = vsub.s32 0, %v2771_v45 }
  0x13   : > { %s521_s30 = sadd.s32 %s4043_s28, %s2379_s29  ;;  %s527_s28 = sadd.s32 1, %s2596_s21  ;;  %v1673_v52 = vsub.s32 2, %v2771_v45  ;;  %v1709_v53 = vsub.s32 3, %v2771_v45  ;;  %v1781_v54 = vsub.s32 5, %v2771_v45  ;;  %v1853_v55 = vsub.s32 7, %v2771_v45 }
  0x14   : > { %s2388_s13 = sshll.u32 %s521_s30, 2  ;;  %p528_p9 = scmp.lt.s32.totalorder %s527_s28, 1  ;;  %v2778_v49 = vrot.slane %v1055_v48, %v1637_v46  ;;  %v2780_v50 = vrot.slane %v1055_v48, %v1745_v47  ;;  %v2788_v56 = vadd.s32 8, %v2771_v45  ;;  %v2791_v57 = vadd.s32 16, %v2771_v45  ;;  %v2825_v5 = vld [vmem:[%s3807_s5] ss:$0 sm:$0xff] }
  0x15   : > { %s523_s16 = scalar_lea.vmem %s3803_s1, %s2388_s13  ;;  %2515 = vmatpush3.bf16.msra.mxu1 %v2566_v37  ;;  %p947_p10 = scmp.gt.s32.totalorder %s2596_s21, 0  ;;  %v2794_v58 = vadd.s32 24, %v2771_v45  ;;  %v2797_v59 = vadd.s32 32, %v2771_v45  ;;  %v1817_v61 = vsub.s32 6, %v2771_v45  ;;  %v2803_v62 = vadd.s32 48, %v2771_v45 }
  0x16   : > { %v550_v0 = vld [vmem:[%s523_s16] sm:$0xf]  ;;  %s508_s17 = scalar_select %p507_p8, %s2596_s21, 1  ;;  %2508 = vmatprep.subr.bf16.mxu1 %v2567_v38  ;;  %v2806_v63 = vadd.s32 56, %v2771_v45  ;;  %v2817_v3 = vadd.s32 80, %v2771_v45 }
  0x17   : > { %552 = vrot.lane.b32.xlu0 %v550_v0, %s2614_s18  ;;  %s4045_s28 = smov (!%p528_p9, %s527_s28), 1  ;;  %v2811_v0 = vld [vmem:[%s3806_s4] ss:$0 sm:$0xff] }
  0x18   : > { %s510_s19 = sadd.s32 %s2379_s29, %s508_s17  ;;  %s4047_s28 = smov (!%p528_p9, %s4045_s28), 1 }
  0x19   : > { %s2720_s20 = sshll.u32 %s510_s19, 2  ;;  %s535_s30 = sadd.s32 %s2379_s29, %s4047_s28  ;;  %2516 = vmatpush3.bf16.msra.mxu1 %v2567_v38 }
  0x1a   : > { %s2726_s22 = scalar_lea.vmem %s3802_s0, %s2720_s20  ;;  %s2393_s13 = sshll.u32 %s535_s30, 2  ;;  %2509 = vmatprep.subr.bf16.mxu1 %v2568_v39 }
  0x1b   : > { %v587_v1 = vld [vmem:[%s2726_s22] sm:$0xf]  ;;  %s537_s16 = scalar_lea.vmem %s3804_s2, %s2393_s13 }
  0x1c   : > { %588 = vxpose.xlu1.b32.start.end [1/1] (short) %v587_v1, 128  ;;  %v620_v2 = vld [vmem:[%s537_s16] sm:$0xf]  ;;  %s948_s28 = scalar_select %p947_p10, 1, 0  ;;  %v1061_v1 = vand.u32 15, %v2771_v45 }
  0x1d   : > { %2517 = vmatpush3.bf16.msra.mxu1 %v2568_v39  ;;  %s2841_s26 = scalar_select %p507_p8, 1, 0 }
  0x1e   : > { %2510 = vmatprep.subr.bf16.mxu1 %v2569_v40  ;;  %s949_s14 = scvt.s32.f32 %s948_s28  ;;  %vm2882_vm3 = vcmp.eq.s32.totalorder %v1061_v1, 0 }
  0x1f   : > { %s993_s21 = scvt.s32.f32 %s2841_s26 }
  0x20   : > { %v2799_v60 = vstv %s949_s14 }
  0x21   : > { %2518 = vmatpush3.bf16.msra.mxu1 %v2569_v40 }
  0x22   : > { %2511 = vmatprep.subr.bf16.mxu1 %v2570_v41 }
  0x25   : > { %2519 = vmatpush3.bf16.msra.mxu1 %v2570_v41 }
  0x26   : > { %2512 = vmatprep.subr.bf16.mxu1 %v2571_v42 }
  0x29   : > { %2520 = vmatpush3.bf16.msra.mxu1 %v2571_v42 }
  0x2a   : > { %2513 = vmatprep.subr.bf16.mxu1 %v2572_v43 }
  0x2d   : > { %2521 = vmatpush3.bf16.msra.mxu1 %v2572_v43 }
  0x59   : > { %621 = vxpose.xlu1.b32.start.end [1/1] (short) (narrow) %v620_v2, 16  ;;  %v2814_v2 = vrot.slane %v1055_v48, %v1601_v51  ;;  %v2898_v51 = vstv %s993_s21  ;;  %s548_s21 = scalar_lea.vmem %s3814_s12, %s2720_s20 }
  0x89   : > { %v553_v4 = vpop.permute.xlu0 %552 }
  0x8a   : > { %555 = vxpose.xlu0.b32.start.end [1/1] (short) (narrow) %v553_v4, 16  ;;  %v2820_v4 = vadd.s32 40, %v2771_v45 }
  0x98   : > { %v604_v6 = vpop.trf.xlu1 }
  0x9c   : > { %v605_v7 = vpop.trf.xlu1 }
  0x9d   : > { %v654_v22 = vpack.c.bf16 %v605_v7, %v604_v6  ;;  %v2827_v6 = vrot.slane %v1055_v48, %v1673_v52  ;;  %v2829_v7 = vrot.slane %v1055_v48, %v1709_v53 }
  0xa0   : > { %v606_v8 = vpop.trf.xlu1 }
  0xa4   : > { %v607_v9 = vpop.trf.xlu1 }
  0xa5   : > { %v655_v23 = vpack.c.bf16 %v607_v9, %v606_v8  ;;  %v2831_v8 = vrot.slane %v1055_v48, %v1781_v54  ;;  %v2833_v9 = vrot.slane %v1055_v48, %v1853_v55 }
  0xa8   : > { %v608_v10 = vpop.trf.xlu1 }
  0xac   : > { %v609_v11 = vpop.trf.xlu1 }
  0xad   : > { %v656_v26 = vpack.c.bf16 %v609_v11, %v608_v10  ;;  %v1068_v11 = vand.u32 15, %v2788_v56 }
  0xaf   : > { %vm2920_vm6 = vcmp.eq.s32.totalorder %v1068_v11, 15 }
  0xb0   : > { %v610_v12 = vpop.trf.xlu1 }
  0xb4   : > { %v611_v13 = vpop.trf.xlu1 }
  0xb5   : > { %v657_v25 = vpack.c.bf16 %v611_v13, %v610_v12  ;;  %v1075_v12 = vand.u32 15, %v2791_v57  ;;  %v1082_v13 = vand.u32 15, %v2794_v58 }
  0xb7   : > { %vm2916_vm5 = vcmp.eq.s32.totalorder %v1075_v12, 0  ;;  %vm2959_vm8 = vcmp.eq.s32.totalorder %v1082_v13, 15 }
  0xb8   : > { %v612_v14 = vpop.trf.xlu1 }
  0xbc   : > { %v613_v15 = vpop.trf.xlu1 }
  0xbd   : > { %v658_v28 = vpack.c.bf16 %v613_v15, %v612_v14  ;;  %v1089_v14 = vand.u32 15, %v2797_v59 }
  0xbf   : > { %vm2953_vm7 = vcmp.eq.s32.totalorder %v1089_v14, 0 }
  0xc0   : > { %v614_v16 = vpop.trf.xlu1 }
  0xc4   : > { %v615_v17 = vpop.trf.xlu1 }
  0xc5   : > { %v659_v29 = vpack.c.bf16 %v615_v17, %v614_v16  ;;  %v2844_v16 = vrot.slane %v1055_v48, %v1817_v61 }
  0xc8   : > { %v616_v19 = vpop.trf.xlu1 }
  0xcc   : > { %v617_v24 = vpop.trf.xlu1 }
  0xcd   : > { %v660_v32 = vpack.c.bf16 %v617_v24, %v616_v19 }
  0xd0   : > { %v618_v27 = vpop.trf.xlu1 }
  0xd4   : > { %v619_v30 = vpop.trf.xlu1 }
  0xd5   : > { %v661_v33 = vpack.c.bf16 %v619_v30, %v618_v27  ;;  %v2862_v27 = vadd.s32 128, %v2771_v45  ;;  %v2869_v30 = vadd.s32 144, %v2771_v45 }
  0xd8   : > { %v637_v31 = vpop.trf.xlu1 }
  0xdc   : > { %v638_v34 = vpop.trf.xlu1 }
  0xdd   : > { %v662_v35 = vpack.c.bf16 %v638_v34, %v637_v31  ;;  %v2872_v31 = vadd.s32 64, %v2771_v45 }
 0x106   : > { %v571_v18 = vpop.trf.xlu0 }
 0x10a   : > { %v572_v20 = vpop.trf.xlu0 }
 0x10b   : > { %v653_v21 = vpack.c.bf16 %v572_v20, %v571_v18 }
 0x10d   : > { %2454 = vmatprep.mubr.msk.bf16.mxu0 %vm664_vm1, %v653_v21  ;;  %v2850_v21 = vadd.s32 96, %v2771_v45 }
 0x10e   : > { %2455 = vmatmul.mubr.msk.bf16.vlgmr.msra.gmra.mxu0 %vm664_vm1, %v654_v22  ;;  %v2853_v22 = vadd.s32 112, %v2771_v45 }
 0x10f   : > { %2458 = vmatprep.mubr.msk.bf16.mxu0 %vm664_vm1, %v655_v23  ;;  %2475 = vmatpush3.bf16.msra.mxu0 %v2565_v36  ;;  %v2880_v36 = vadd.s32 88, %v2771_v45 }
 0x110   : > { %2476 = vmatprep.subr.bf16.mxu0 %v2566_v37 }
 0x111   : > { %3851 = vst [vmem:[#allocation4_spill] sm:$0xff] %v2880_v36 }
 0x113   : > { %2477 = vmatpush3.bf16.msra.mxu0 %v2566_v37 }
 0x114   : > { %2478 = vmatprep.subr.bf16.mxu0 %v2567_v38 }
 0x116   : > { %2459 = vmatmul.mubr.msk.bf16.gmra.mxu0 %vm664_vm1, %v656_v26  ;;  %v2859_v26 = vadd.s32 120, %v2771_v45 }
 0x117   : > { %2462 = vmatprep.mubr.msk.bf16.mxu0 %vm664_vm1, %v657_v25  ;;  %2479 = vmatpush3.bf16.msra.mxu0 %v2567_v38 }
 0x118   : > { %2480 = vmatprep.subr.bf16.mxu0 %v2568_v39 }
 0x11b   : > { %2481 = vmatpush3.bf16.msra.mxu0 %v2568_v39 }
 0x11c   : > { %2482 = vmatprep.subr.bf16.mxu0 %v2569_v40 }
 0x11e   : > { %2463 = vmatmul.mubr.msk.bf16.gmra.mxu0 %vm664_vm1, %v658_v28 }
 0x11f   : > { %2466 = vmatprep.mubr.msk.bf16.mxu0 %vm664_vm1, %v659_v29  ;;  %2483 = vmatpush3.bf16.msra.mxu0 %v2569_v40  ;;  %v2866_v29 = vadd.s32 152, %v2771_v45 }
 0x120   : > { %2484 = vmatprep.subr.bf16.mxu0 %v2570_v41 }
 0x123   : > { %2485 = vmatpush3.bf16.msra.mxu0 %v2570_v41  ;;  %v2889_v41 = vadd.s32 104, %v2771_v45 }
 0x124   : > { %2486 = vmatprep.subr.bf16.mxu0 %v2571_v42 }
 0x125   : > { %3854 = vst [vmem:[#allocation5_spill] sm:$0xff] %v2889_v41 }
 0x126   : > { %2467 = vmatmul.mubr.msk.bf16.gmra.mxu0 %vm664_vm1, %v660_v32  ;;  %v2875_v32 = vadd.s32 72, %v2771_v45 }
 0x127   : > { %2470 = vmatprep.mubr.msk.bf16.mxu0 %vm664_vm1, %v661_v33  ;;  %2487 = vmatpush3.bf16.msra.mxu0 %v2571_v42  ;;  %v2892_v42 = vadd.s32 136, %v2771_v45 }
 0x128   : > { %2488 = vmatprep.subr.bf16.mxu0 %v2572_v43 }
 0x129   : > { %3855 = vst [vmem:[#allocation6_spill] sm:$0xff] %v2892_v42 }
 0x12b   : > { %2489 = vmatpush3.bf16.msra.mxu0 %v2572_v43 }
 0x12e   : > { %2471 = vmatmul.mubr.msk.bf16.gmra.mxu0 %vm664_vm1, %v662_v35 }
 0x1ce   : > { %v2456_v10 = vpop.f32.mrf.mxu0 }
 0x1cf   : > { %v821_v15 = vmul.f32 %v2456_v10, %v2811_v0 }
 0x1d0   : > { %v733_v19 = vpop.f32.mrf.mxu0 }
 0x1d1   : > { %v848_v24 = vadd.f32 %v2825_v5, %v821_v15  ;;  %v819_v25 = vmul.f32 %v2811_v0, %v733_v19 }
 0x1d2   : > { %v2457_v28 = vpop.f32.mrf.mxu0 }
 0x1d3   : > { %v868_v33 = vmax.f32 %v848_v24, 0.0  ;;  %v846_v34 = vadd.f32 %v2825_v5, %v819_v25  ;;  %v822_v35 = vmul.f32 %v2457_v28, %v2811_v0 }
 0x1d4   : > { %v736_v38 = vpop.f32.mrf.mxu0 }
 0x1d5   : > { %v2894_v43 = vmin.f32 %v868_v33, 6.0  ;;  %v866_v44 = vmax.f32 %v846_v34, 0.0  ;;  %v849_v46 = vadd.f32 %v2825_v5, %v822_v35  ;;  %v820_v47 = vmul.f32 %v2811_v0, %v736_v38 }
 0x1d6   : > { %v2460_v48 = vpop.f32.mrf.mxu0 }
 0x1d7   : > { %v886_v61 = vmin.f32 %v866_v44, 6.0  ;;  %v869_v1 = vmax.f32 %v849_v46, 0.0  ;;  %v847_v10 = vadd.f32 %v2825_v5, %v820_v47  ;;  %v825_v15 = vmul.f32 %v2460_v48, %v2811_v0 }
 0x1d8   : > { %v749_v19 = vpop.f32.mrf.mxu0  ;;  %v1341_v24 = vrot.slane %v2894_v43, 7  ;;  %v1641_v33 = vmul.f32 %v2778_v49, %v2894_v43 }
 0x1d9   : > { %v823_v25 = vmul.f32 %v2811_v0, %v749_v19  ;;  %v1035_v34 = vmul.f32 %v2799_v60, %v886_v61  ;;  %v2914_v35 = vmin.f32 %v869_v1, 6.0  ;;  %v867_v38 = vmax.f32 %v847_v10, 0.0 }
 0x1da   : > { %v852_v47 = vadd.f32 %v2825_v5, %v825_v15  ;;  %v2461_v48 = vpop.f32.mrf.mxu0  ;;  %v1482_v19 = vrot.slane %v2894_v43, 1  ;;  %v2930_v61 = vmul.f32 %v2780_v50, %v2894_v43 }
 0x1db   : > { %v850_v12 = vadd.f32 %v2825_v5, %v823_v25  ;;  %v1338_v1 = vrot.slane %v1035_v34, 7  ;;  %v1479_v10 = vrot.slane %v1035_v34, 1  ;;  %v1343_v11 = vrot.slane %v2914_v35, 7 }
 0x1dc   : > { %v826_v28 = vmul.f32 %v2461_v48, %v2811_v0  ;;  %v2935_v57 = vpop.f32.mrf.mxu0  ;;  %v1639_v15 = vmul.f32 %v2778_v49, %v1035_v34  ;;  %v1484_v56 = vrot.slane %v2914_v35, 1  ;;  %v1642_v45 = vmul.f32 %v2778_v49, %v2914_v35 }
 0x1dd   : > { %v887_v23 = vmin.f32 %v867_v38, 6.0  ;;  %v1397_v43 = vsel %vm1337_vm2, 0.0, %v1338_v1  ;;  %v1344_v25 = vsel %vm1337_vm2, %v1341_v24, %v1343_v11  ;;  %v872_v54 = vmax.f32 %v852_v47, 0.0 }
 0x1de   : > { %v870_v55 = vmax.f32 %v850_v12, 0.0  ;;  %v2943_v52 = vpop.f32.mrf.mxu0  ;;  %v1438_v48 = vsel %vm2882_vm3, 0.0, %v1397_v43  ;;  %v1485_v53 = vsel %vm1478_vm4, %v1482_v19, %v1484_v56  ;;  %v1606_v34 = vmul.f32 %v2814_v2, %v1344_v25 }
 0x1df   : > { %v1748_v40 = vmul.f32 %v2780_v50, %v2914_v35  ;;  %v1603_v37 = vmul.f32 %v2814_v2, %v1438_v48  ;;  %v1677_v12 = vmul.f32 %v2827_v6, %v1485_v53  ;;  %v1712_v43 = vmul.f32 %v2829_v7, %v1344_v25 }
 0x1e0   : > { %v1036_v35 = vmul.f32 %v2799_v60, %v887_v23  ;;  %v2967_v39 = vpop.f32.mrf.mxu0  ;;  %v2969_v59 = vadd.f32 %v1642_v45, %v1606_v34  ;;  %v2972_v14 = vmul.f32 %v2831_v8, %v1485_v53  ;;  %v2974_v58 = vmin.f32 %v872_v54, 6.0 }
 0x1e1   : > { %v2976_v13 = vmin.f32 %v870_v55, 6.0  ;;  %v1655_v20 = vadd.f32 %v1639_v15, %v1603_v37  ;;  %v853_v17 = vadd.f32 %v2825_v5, %v826_v28 }
 0x1e2   : > { %v1339_v18 = vrot.slane %v1036_v35, 7  ;;  %v1480_v48 = vrot.slane %v1036_v35, 1  ;;  %v2465_v42 = vpop.f32.mrf.mxu0  ;;  %v1640_v25 = vmul.f32 %v2778_v49, %v1036_v35  ;;  %v2984_v53 = vmul.f32 %v2778_v49, %v2974_v58 }
 0x1e3   : > { %v3005_v46 = vmul.f32 %v2833_v9, %v2974_v58 }
 0x1e4   : > { %3864 = vst [vmem:[#allocation7_spill] sm:$0xff] %v2984_v53  ;;  %v1340_v54 = vsel %vm1337_vm2, %v1338_v1, %v1339_v18  ;;  %v1342_v55 = vsel %vm1337_vm2, %v1339_v18, %v1341_v24  ;;  %v1481_v45 = vsel %vm1478_vm4, %v1479_v10, %v1480_v48  ;;  %v1483_v15 = vsel %vm1478_vm4, %v1480_v48, %v1482_v19  ;;  %v768_v28 = vpop.f32.mrf.mxu0 }
 0x1e5   : > { %v1440_v34 = vsel %vm2916_vm5, 0.0, %v1342_v55  ;;  %v1580_v37 = vsel %vm2920_vm6, 0.0, %v1483_v15  ;;  %v1604_v35 = vmul.f32 %v2814_v2, %v1340_v54  ;;  %v1675_v23 = vmul.f32 %v2827_v6, %v1481_v45 }
 0x1e6   : > { %v1605_v60 = vmul.f32 %v2814_v2, %v1440_v34  ;;  %v1676_v1 = vmul.f32 %v2827_v6, %v1580_v37  ;;  %v1711_v18 = vmul.f32 %v2829_v7, %v1440_v34  ;;  %v3001_v24 = vmul.f32 %v2780_v50, %v2974_v58  ;;  %v2468_v19 = vpop.f32.mrf.mxu0 }
 0x1e7   : > { %v1656_v44 = vadd.f32 %v1640_v25, %v1604_v35  ;;  %v3820_v10 = vrot.slane %v2976_v13, 7  ;;  %v3818_v48 = vrot.slane %v2976_v13, 1  ;;  %v1691_v55 = vadd.f32 %v1675_v23, %v1655_v20 }
 0x1e8   : > { %3865 = vst [vmem:[#allocation8_spill] sm:$0xff] %v3001_v24  ;;  %v1657_v54 = vadd.f32 %v1641_v33, %v1605_v60  ;;  %v1643_v45 = vmul.f32 %v2778_v49, %v2976_v13  ;;  %v873_v15 = vmax.f32 %v853_v17, 0.0  ;;  %v1749_v35 = vmul.f32 %v2780_v50, %v2976_v13  ;;  %v781_v41 = vpop.f32.mrf.mxu0 }
 0x1e9   : > { %v1692_v34 = vadd.f32 %v1676_v1, %v1656_v44  ;;  %v1346_v37 = vsel %vm1337_vm2, %v1343_v11, %v3820_v10  ;;  %v1487_v25 = vsel %vm1478_vm4, %v1484_v56, %v3818_v48  ;;  %v3035_v23 = vadd.f32 %v1711_v18, %v1691_v55 }
 0x1ea   : > { %v1693_v24 = vadd.f32 %v1677_v12, %v1657_v54  ;;  %v3021_v20 = vsel %vm2953_vm7, 0.0, %v1346_v37  ;;  %v3025_v17 = vsel %vm2959_vm8, 0.0, %v1487_v25  ;;  %v3027_v33 = vmin.f32 %v873_v15, 6.0 }
 0x1eb   : > { %v1728_v11 = vadd.f32 %v1712_v43, %v1692_v34  ;;  %v1607_v60 = vmul.f32 %v2814_v2, %v3021_v20  ;;  %v1678_v56 = vmul.f32 %v2827_v6, %v3025_v17  ;;  %v1713_v12 = vmul.f32 %v2829_v7, %v3021_v20  ;;  %v2469_v34 = vpop.f32.mrf.mxu0 }
 0x1ec   : > { %v3817_v38 = vrot.slane %v3027_v33, 7  ;;  %v3819_v47 = vrot.slane %v3027_v33, 1  ;;  %v1646_v1 = vmul.f32 %v2778_v49, %v3027_v33  ;;  %v3047_v15 = vmul.f32 %v2780_v50, %v3027_v33 }
 0x1ed   : > { %v3041_v44 = vadd.f32 %v1748_v40, %v1728_v11  ;;  %v3043_v43 = vadd.f32 %v1643_v45, %v1607_v60  ;;  %v1729_v54 = vadd.f32 %v1713_v12, %v1693_v24  ;;  %v3868_v18 = vrot.slane %v2974_v58, 7 }
 0x1ee   : > { %3867 = vst [vmem:[#allocation10_spill] sm:$0xff] %v3047_v15  ;;  %v3870_v40 = vrot.slane %v2974_v58, 1  ;;  %v3065_v24 = vmul.f32 %v2833_v9, %v3027_v33  ;;  %v824_v37 = vmul.f32 %v2811_v0, %v2935_v57  ;;  %v3871_v25 = vand.u32 15, %v2803_v62 }
 0x1ef   : > { %3866 = vst [vmem:[#allocation9_spill] sm:$0xff] %v3043_v43  ;;  %v3054_v55 = vsel %vm1337_vm2, %v3868_v18, %v3817_v38  ;;  %v3075_v60 = vadd.f32 %v1749_v35, %v1729_v54  ;;  %v829_v62 = vmul.f32 %v2943_v52, %v2811_v0  ;;  %v827_v57 = vmul.f32 %v2811_v0, %v2967_v39 }
 0x1f0   : > { %3869 = vst [vmem:[#allocation11_spill] sm:$0xff] %v3054_v55  ;;  %v3061_v45 = vsel %vm1478_vm4, %v3870_v40, %v3819_v47  ;;  %vm3071_vm9 = vcmp.eq.s32.totalorder %v3871_v25, 0  ;;  %v1610_v12 = vmul.f32 %v2814_v2, %v3054_v55  ;;  %v1694_v40 = vadd.f32 %v1678_v56, %v2969_v59  ;;  %v3097_v56 = vpop.f32.mrf.mxu0 }
 0x1f1   : > { %v3081_v18 = vmul.f32 %v2827_v6, %v3061_v45  ;;  %v851_v38 = vadd.f32 %v2825_v5, %v824_v37  ;;  %v830_v35 = vmul.f32 %v2465_v42, %v2811_v0  ;;  %v3092_v54 = vmul.f32 %v2844_v16, %v3054_v55 }
 0x1f2   : > { %v828_v25 = vmul.f32 %v2811_v0, %v768_v28  ;;  %v833_v48 = vmul.f32 %v2468_v19, %v2811_v0  ;;  %v831_v59 = vmul.f32 %v2811_v0, %v781_v41  ;;  %v856_v52 = vadd.f32 %v2825_v5, %v829_v62 }
 0x1f3   : > { %3874 = vst [vmem:[#allocation12_spill] sm:$0xff] %v3081_v18  ;;  %v871_v37 = vmax.f32 %v851_v38, 0.0  ;;  %v854_v47 = vadd.f32 %v2825_v5, %v827_v57  ;;  %v857_v39 = vadd.f32 %v2825_v5, %v830_v35  ;;  %v3875_v42 = vand.u32 15, %v2806_v63  ;;  %v2472_v18 = vpop.f32.mrf.mxu0 }
 0x1f4   : > { %v855_v28 = vadd.f32 %v2825_v5, %v828_v25  ;;  %v860_v19 = vadd.f32 %v2825_v5, %v833_v48  ;;  %v858_v41 = vadd.f32 %v2825_v5, %v831_v59  ;;  %v834_v38 = vmul.f32 %v2469_v34, %v2811_v0 }
 0x1f5   : > { %vm3104_vm10 = vcmp.eq.s32.totalorder %v3875_v42, 15  ;;  %v3112_v15 = vmin.f32 %v871_v37, 6.0  ;;  %v876_v62 = vmax.f32 %v856_v52, 0.0  ;;  %v874_v57 = vmax.f32 %v854_v47, 0.0 }
 0x1f6   : > { %v877_v55 = vmax.f32 %v857_v39, 0.0  ;;  %v3114_v35 = vadd.f32 %v1646_v1, %v1610_v12  ;;  %v875_v63 = vmax.f32 %v855_v28, 0.0  ;;  %v880_v42 = vmax.f32 %v860_v19, 0.0 }
 0x1f7   : > { %v878_v36 = vmax.f32 %v858_v41, 0.0  ;;  %v1347_v43 = vrot.slane %v3112_v15, 7  ;;  %v1644_v48 = vmul.f32 %v2778_v49, %v3112_v15  ;;  %v3879_v34 = vand.u32 15, %v2817_v3 }
 0x1f8   : > { %3878 = vst [vmem:[#allocation13_spill] sm:$0xff] %v3114_v35  ;;  %v861_v47 = vadd.f32 %v2825_v5, %v834_v38  ;;  %v1750_v1 = vmul.f32 %v2780_v50, %v3112_v15  ;;  %v3129_v12 = vmin.f32 %v876_v62, 6.0  ;;  %v3131_v37 = vmin.f32 %v874_v57, 6.0 }
 0x1f9   : > { %vm3122_vm11 = vcmp.eq.s32.totalorder %v3879_v34, 0  ;;  %v3133_v52 = vmin.f32 %v877_v55, 6.0  ;;  %v3884_v39 = vrot.slane %v2976_v13, 7  ;;  %v3885_v3 = vrot.slane %v2974_v58, 7 }
 0x1fa   : > { %3882 = vst [vmem:[#allocation14_spill] sm:$0xff] %v3129_v12  ;;  %v3143_v41 = vmin.f32 %v875_v63, 6.0  ;;  %v3145_v38 = vmin.f32 %v880_v42, 6.0  ;;  %v3887_v62 = vand.u32 15, %v2850_v21  ;;  %v3161_v63 = vmin.f32 %v878_v36, 6.0  ;;  %v797_v42 = vpop.f32.mrf.mxu0 }
 0x1fb   : > { %3883 = vst [vmem:[#allocation15_spill] sm:$0xff] %v3133_v52  ;;  %v3138_v28 = vsel %vm1337_vm2, %v3884_v39, %v1347_v43  ;;  %v1350_v19 = vsel %vm1337_vm2, %v1347_v43, %v3885_v3  ;;  %v1357_v39 = vrot.slane %v3129_v12, 7  ;;  %v3171_v11 = vmul.f32 %v2778_v49, %v3129_v12 }
 0x1fc   : > { %3886 = vst [vmem:[#allocation16_spill] sm:$0xff] %v3145_v38  ;;  %vm3149_vm12 = vcmp.eq.s32.totalorder %v3887_v62, 0  ;;  %v3155_v55 = vsel %vm3071_vm9, 0.0, %v1350_v19  ;;  %v1608_v34 = vmul.f32 %v2814_v2, %v3138_v28  ;;  %v1714_v43 = vmul.f32 %v2829_v7, %v3138_v28  ;;  %3890 = vst [vmem:[#allocation17_spill] sm:$0xff] %v3161_v63 }
 0x1fd   : > { %v3165_v21 = vmul.f32 %v2814_v2, %v3155_v55  ;;  %3892 = vst [vmem:[#allocation19_spill] sm:$0xff] %v3171_v11  ;;  %v3177_v36 = vmul.f32 %v2780_v50, %v3129_v12  ;;  %v3823_v25 = vrot.slane %v3131_v37, 1  ;;  %v3183_v53 = vmul.f32 %v2778_v49, %v3131_v37  ;;  %v2473_v11 = vpop.f32.mrf.mxu0 }
 0x1fe   : > { %v3173_v19 = vadd.f32 %v1644_v48, %v1608_v34  ;;  %v1730_v62 = vadd.f32 %v1714_v43, %v1694_v40  ;;  %v3187_v3 = vmul.f32 %v2780_v50, %v3131_v37  ;;  %v1359_v48 = vrot.slane %v3133_v52, 7 }
 0x1ff   : > { %3891 = vst [vmem:[#allocation18_spill] sm:$0xff] %v3165_v21  ;;  %3894 = vst [vmem:[#allocation21_spill] sm:$0xff] %v3177_v36  ;;  %v3897_v40 = vrot.slane %v3027_v33, 1  ;;  %v1650_v36 = vmul.f32 %v2778_v49, %v3133_v52  ;;  %v3216_v35 = vmul.f32 %v2778_v49, %v3143_v41  ;;  %v3220_v10 = vmul.f32 %v2780_v50, %v3143_v41 }
 0x200   : > { %3893 = vst [vmem:[#allocation20_spill] sm:$0xff] %v3173_v19  ;;  %3895 = vst [vmem:[#allocation22_spill] sm:$0xff] %v3183_v53  ;;  %v3190_v34 = vadd.f32 %v1750_v1, %v1730_v62  ;;  %v3209_v1 = vmul.f32 %v2780_v50, %v3133_v52  ;;  %v3828_v62 = vrot.slane %v3143_v41, 7  ;;  %v3229_v52 = vmul.f32 %v2778_v49, %v3145_v38 }
 0x201   : > { %3896 = vst [vmem:[#allocation23_spill] sm:$0xff] %v3187_v3  ;;  %v1495_v43 = vsel %vm1478_vm4, %v3897_v40, %v3823_v25  ;;  %v3205_v3 = vsel %vm1337_vm2, %v1357_v39, %v1359_v48  ;;  %3900 = vst [vmem:[#allocation26_spill] sm:$0xff] %v3216_v35  ;;  %v1651_v21 = vmul.f32 %v2778_v49, %v3161_v63  ;;  %v881_v12 = vmax.f32 %v861_v47, 0.0 }
 0x202   : > { %v3202_v19 = vsel %vm3104_vm10, 0.0, %v1495_v43  ;;  %3898 = vst [vmem:[#allocation24_spill] sm:$0xff] %v3205_v3  ;;  %3899 = vst [vmem:[#allocation25_spill] sm:$0xff] %v3209_v1  ;;  %v1614_v40 = vmul.f32 %v2814_v2, %v3205_v3  ;;  %v1365_v43 = vrot.slane %v3145_v38, 7  ;;  %v1358_v25 = vsel %vm1337_vm2, %v3828_v62, %v1357_v39  ;;  %v800_v62 = vpop.f32.mrf.mxu0 }
 0x203   : > { %3901 = vst [vmem:[#allocation27_spill] sm:$0xff] %v3220_v10  ;;  %v1361_v3 = vrot.slane %v3161_v63, 7  ;;  %v3236_v35 = vsel %vm3122_vm11, 0.0, %v1358_v25  ;;  %v3240_v10 = vmul.f32 %v2780_v50, %v3145_v38  ;;  %v3906_v59 = vand.u32 15, %v2853_v22 }
 0x204   : > { %v3232_v53 = vadd.f32 %v1650_v36, %v1614_v40  ;;  %3903 = vst [vmem:[#allocation29_spill] sm:$0xff] %v3236_v35  ;;  %v832_v36 = vmul.f32 %v2811_v0, %v3097_v56  ;;  %v837_v39 = vmul.f32 %v2472_v18, %v2811_v0  ;;  %v3263_v56 = vmin.f32 %v881_v12, 6.0 }
 0x205   : > { %3904 = vst [vmem:[#allocation30_spill] sm:$0xff] %v3240_v10  ;;  %v1362_v1 = vsel %vm1337_vm2, %v1359_v48, %v1361_v3  ;;  %vm3254_vm13 = vcmp.eq.s32.totalorder %v3906_v59, 0  ;;  %v835_v48 = vmul.f32 %v2811_v0, %v797_v42  ;;  %v838_v10 = vmul.f32 %v2473_v11, %v2811_v0 }
 0x206   : > { %3902 = vst [vmem:[#allocation28_spill] sm:$0xff] %v3232_v53  ;;  %v3250_v25 = vsel %vm3149_vm12, 0.0, %v1362_v1  ;;  %3909 = vst [vmem:[#allocation32_spill] sm:$0xff] %v3263_v56  ;;  %v859_v57 = vadd.f32 %v2825_v5, %v832_v36  ;;  %v836_v1 = vmul.f32 %v2811_v0, %v800_v62  ;;  %v3269_v22 = vmul.f32 %v2780_v50, %v3161_v63 }
 0x207   : > { %3905 = vst [vmem:[#allocation31_spill] sm:$0xff] %v3250_v25  ;;  %v1615_v47 = vmul.f32 %v2814_v2, %v3250_v25  ;;  %v864_v59 = vadd.f32 %v2825_v5, %v837_v39  ;;  %v862_v18 = vadd.f32 %v2825_v5, %v835_v48  ;;  %v3911_v42 = vand.u32 15, %v2862_v27 }
 0x208   : > { %3910 = vst [vmem:[#allocation33_spill] sm:$0xff] %v3269_v22  ;;  %v3914_v12 = vand.u32 15, %v2859_v26  ;;  %v865_v0 = vadd.f32 %v2825_v5, %v838_v10  ;;  %v1367_v39 = vrot.slane %v3263_v56, 7  ;;  %v1508_v48 = vrot.slane %v3263_v56, 1 }
 0x209   : > { %vm3275_vm14 = vcmp.eq.s32.totalorder %v3911_v42, 0  ;;  %v3286_v62 = vadd.f32 %v1651_v21, %v1615_v47  ;;  %v3918_v27 = vrot.slane %v3112_v15, 1  ;;  %v3919_v42 = vrot.slane %v2976_v13, 1 }
 0x20a   : > { %vm3281_vm15 = vcmp.eq.s32.totalorder %v3914_v12, 15  ;;  %v1654_v26 = vmul.f32 %v2778_v49, %v3263_v56  ;;  %v879_v12 = vmax.f32 %v859_v57, 0.0  ;;  %v884_v25 = vmax.f32 %v864_v59, 0.0 }
 0x20b   : > { %3917 = vst [vmem:[#allocation34_spill] sm:$0xff] %v3286_v62  ;;  %v3295_v22 = vsel %vm1478_vm4, %v3919_v42, %v3918_v27  ;;  %v882_v53 = vmax.f32 %v862_v18, 0.0  ;;  %v3300_v21 = vsel %vm1337_vm2, %v1365_v43, %v1367_v39  ;;  %v3920_v10 = vrot.slane %v3145_v38, 1 }
 0x20c   : > { %v885_v62 = vmax.f32 %v865_v0, 0.0  ;;  %v863_v63 = vadd.f32 %v2825_v5, %v836_v1  ;;  %v1618_v27 = vmul.f32 %v2814_v2, %v3300_v21  ;;  %v3312_v42 = vmul.f32 %v2780_v50, %v3263_v56 }
 0x20d   : > { %v3305_v47 = vsel %vm1478_vm4, %v3920_v10, %v1508_v48  ;;  %v3314_v57 = vmin.f32 %v879_v12, 6.0  ;;  %v904_v59 = vmin.f32 %v884_v25, 6.0  ;;  %v3318_v18 = vmul.f32 %v2829_v7, %v3300_v21 }
 0x20e   : > { %3921 = vst [vmem:[#allocation35_spill] sm:$0xff] %v3305_v47  ;;  %3922 = vst [vmem:[#allocation36_spill] sm:$0xff] %v3312_v42  ;;  %v3320_v38 = vmin.f32 %v882_v53, 6.0  ;;  %v1689_v0 = vmul.f32 %v2827_v6, %v3305_v47  ;;  %v905_v5 = vmin.f32 %v885_v62, 6.0  ;;  %v1670_v1 = vadd.f32 %v1654_v26, %v1618_v27 }
 0x20f   : > { %3923 = vst [vmem:[#allocation37_spill] sm:$0xff] %v3318_v18  ;;  %v1363_v10 = vrot.slane %v3314_v57, 7  ;;  %v3925_v42 = vand.u32 15, %v2866_v29  ;;  %v3926_v12 = vmov 0  ;;  %v883_v25 = vmax.f32 %v863_v63, 0.0 }
 0x210   : > { %3924 = vst [vmem:[#allocation38_spill] sm:$0xff] %v3320_v38  ;;  %v3929_v18 = vand.u32 15, %v2869_v30  ;;  %v1652_v62 = vmul.f32 %v2778_v49, %v3314_v57  ;;  %v3341_v26 = vmul.f32 %v2898_v51, %v904_v59  ;;  %v1369_v27 = vrot.slane %v3320_v38, 7 }
 0x211   : > { %vm3328_vm0 = vcmp.eq.s32.totalorder %v3925_v42, 15  ;;  %v3933_v42 = vand.u32 15, %v2820_v4  ;;  %v3352_v30 = vsel %vm1337_vm2, %v1361_v3, %v1363_v10  ;;  %v3357_v49 = vmul.f32 %v2780_v50, %v3314_v57 }
 0x212   : > { %v3927_v12 = vsel %vm3328_vm0, 4294967295, %v3926_v12  ;;  %vm3334_vm1 = vcmp.eq.s32.totalorder %v3929_v18, 0  ;;  %3932 = vst [vmem:[#allocation40_spill] sm:$0xff] %v3341_v26  ;;  %v1366_v18 = vsel %vm1337_vm2, %v1363_v10, %v1365_v43  ;;  %v1761_v59 = vmul.f32 %v2780_v50, %v3320_v38 }
 0x213   : > { %3928 = vst [vmem:[#allocation39_spill] sm:$0xff] %v3927_v12  ;;  %vm3347_vm3 = vcmp.eq.s32.totalorder %v3933_v42, 15  ;;  %v3363_v35 = vsel %vm3254_vm13, 0.0, %v1366_v18  ;;  %v1616_v4 = vmul.f32 %v2814_v2, %v3352_v30  ;;  %v3369_v3 = vmul.f32 %v2829_v7, %v3352_v30 }
 0x214   : > { %v3373_v43 = vmul.f32 %v2833_v9, %v3320_v38  ;;  %v1373_v10 = vrot.slane %v3341_v26, 7  ;;  %v1370_v29 = vsel %vm1337_vm2, %v1367_v39, %v1369_v27  ;;  %v3937_v40 = vrot.slane %v3320_v38, 1 }
 0x215   : > { %v3383_v47 = vmul.f32 %v2833_v9, %v3341_v26  ;;  %v3387_v56 = vsel %vm3275_vm14, 0.0, %v1370_v29  ;;  %v1617_v42 = vmul.f32 %v2814_v2, %v3363_v35  ;;  %v3395_v39 = vadd.f32 %v1652_v62, %v1616_v4 }
 0x216   : > { %3936 = vst [vmem:[#allocation41_spill] sm:$0xff] %v3373_v43  ;;  %v1511_v18 = vsel %vm1478_vm4, %v1508_v48, %v3937_v40  ;;  %3939 = vst [vmem:[#allocation43_spill] sm:$0xff] %v3387_v56  ;;  %v3400_v40 = vmul.f32 %v2898_v51, %v905_v5  ;;  %v1725_v36 = vmul.f32 %v2829_v7, %v3387_v56  ;;  %v3941_v29 = vrot.slane %v2974_v58, 1 }
 0x217   : > { %3938 = vst [vmem:[#allocation42_spill] sm:$0xff] %v3383_v47  ;;  %v3391_v43 = vsel %vm3281_vm15, 0.0, %v1511_v18  ;;  %v3402_v47 = vmin.f32 %v883_v25, 6.0  ;;  %v1669_v11 = vadd.f32 %v3229_v52, %v1617_v42  ;;  %v3942_v18 = vrot.slane %v3112_v15, 1 }
 0x218   : > { %3940 = vst [vmem:[#allocation44_spill] sm:$0xff] %v3391_v43  ;;  %v1690_v48 = vmul.f32 %v2827_v6, %v3391_v43  ;;  %v3414_v4 = vmul.f32 %v2827_v6, %v3295_v22  ;;  %v1375_v51 = vrot.slane %v3400_v40, 7  ;;  %v1763_v52 = vadd.f32 %v2930_v61, %v3035_v23 }
 0x219   : > { %v1491_v62 = vsel %vm1478_vm4, %v3942_v18, %v3941_v29  ;;  %v1371_v25 = vrot.slane %v3402_v47, 7  ;;  %v1705_v42 = vadd.f32 %v1689_v0, %v1669_v11  ;;  %v1762_v29 = vmul.f32 %v2780_v50, %v3402_v47 }
 0x21a   : > { %v1706_v56 = vadd.f32 %v1690_v48, %v1670_v1  ;;  %v3943_v18 = vand.u32 15, %v2872_v31  ;;  %v1376_v5 = vsel %vm1337_vm2, %v1373_v10, %v1375_v51  ;;  %v3946_v38 = vrot.slane %v3400_v40, 1 }
 0x21b   : > { %v3437_v61 = vsel %vm1337_vm2, %v1369_v27, %v1371_v25  ;;  %v3440_v23 = vsel %vm1337_vm2, %v1371_v25, %v1373_v10  ;;  %v1741_v50 = vadd.f32 %v1725_v36, %v1705_v42  ;;  %v3446_v0 = vmul.f32 %v2844_v16, %v1376_v5 }
 0x21c   : > { %vm3426_vm5 = vcmp.eq.s32.totalorder %v3943_v18, 0  ;;  %v3434_v43 = vsel %vm1478_vm4, %v3946_v38, 0.0  ;;  %v1726_v38 = vmul.f32 %v2829_v7, %v3437_v61  ;;  %v3455_v27 = vmul.f32 %v2833_v9, %v3402_v47 }
 0x21d   : > { %3947 = vst [vmem:[#allocation45_spill] sm:$0xff] %v3434_v43  ;;  %3948 = vst [vmem:[#allocation46_spill] sm:$0xff] %v3446_v0  ;;  %v1584_v10 = vsel %vm3347_vm3, 0.0, %v1491_v62  ;;  %v1784_v48 = vmul.f32 %v2831_v8, %v3025_v17  ;;  %v3949_v11 = vand.u32 15, %v2875_v32  ;;  %v3467_v51 = vadd.f32 %v1761_v59, %v1741_v50  ;;  %v3480_v59 = vld [vmem:[%s3808_s6 + $0x8] ss:$0 sm:$0xff] }
 0x21e   : > { %v1680_v5 = vmul.f32 %v2827_v6, %v1584_v10  ;;  %v1785_v25 = vmul.f32 %v2831_v8, %v3295_v22  ;;  %v1786_v42 = vmul.f32 %v2831_v8, %v1584_v10  ;;  %v1742_v63 = vadd.f32 %v1726_v38, %v1706_v56 }
 0x21f   : > { %vm3463_vm6 = vcmp.eq.s32.totalorder %v3949_v11, 15  ;;  %v1799_v62 = vadd.f32 %v2972_v14, %v1763_v52  ;;  %v1800_v17 = vadd.f32 %v1784_v48, %v3041_v44  ;;  %v1819_v32 = vmul.f32 %v2844_v16, %v3021_v20 }
 0x220   : > { %v1801_v18 = vadd.f32 %v1785_v25, %v3075_v60  ;;  %v1802_v50 = vadd.f32 %v1786_v42, %v3190_v34  ;;  %v1820_v11 = vmul.f32 %v2844_v16, %v3138_v28  ;;  %v1821_v14 = vmul.f32 %v2844_v16, %v3155_v55 }
 0x221   : > { %v3488_v56 = vadd.f32 %v1762_v29, %v1742_v63  ;;  %v1835_v44 = vadd.f32 %v1819_v32, %v1799_v62  ;;  %v1855_v20 = vmul.f32 %v2833_v9, %v2976_v13  ;;  %v1856_v52 = vmul.f32 %v2833_v9, %v3112_v15  ;;  %v3505_v15 = vld [vmem:[%s3809_s7] ss:$0 sm:$0xff] }
 0x222   : > { %v1836_v38 = vadd.f32 %v1820_v11, %v1800_v17  ;;  %v1837_v48 = vadd.f32 %v1821_v14, %v1801_v18  ;;  %v1838_v60 = vadd.f32 %v3092_v54, %v1802_v50  ;;  %v1891_v34 = vmul.f32 %v3480_v59, %v3295_v22 }
 0x223   : > { %v1871_v28 = vadd.f32 %v1855_v20, %v1835_v44  ;;  %v1892_v25 = vmul.f32 %v3480_v59, %v1584_v10  ;;  %v1893_v29 = vmul.f32 %v3480_v59, %v3061_v45  ;;  %v1894_v42 = vmul.f32 %v3480_v59, %v3202_v19 }
 0x224   : > { %v1872_v13 = vadd.f32 %v1856_v52, %v1836_v38  ;;  %v1873_v54 = vadd.f32 %v3005_v46, %v1837_v48  ;;  %v1874_v63 = vadd.f32 %v3065_v24, %v1838_v60  ;;  %v3952_v22 = vrot.slane %v3131_v37, 7  ;;  %v3957_v48 = vld [vmem:[#allocation14_spill] sm:$0xff] }
 0x225   : > { %v3953_v10 = vrot.slane %v3027_v33, 7  ;;  %v1907_v17 = vadd.f32 %v1891_v34, %v1871_v28  ;;  %v3954_v32 = vrot.slane %v3143_v41, 7  ;;  %v1496_v46 = vrot.slane %v3143_v41, 1  ;;  %v3529_v33 = vld [vmem:[%s3810_s8] ss:$0 sm:$0xff] }
 0x226   : > { %v3955_v18 = vmov %v3952_v22  ;;  %v1908_v24 = vadd.f32 %v1892_v25, %v1872_v13  ;;  %v1909_v14 = vadd.f32 %v1893_v29, %v1873_v54  ;;  %v1910_v44 = vadd.f32 %v1894_v42, %v1874_v63  ;;  %v3959_v63 = vld [vmem:[#allocation18_spill] sm:$0xff] }
 0x227   : > { %v1354_v62 = vsel %vm1337_vm2, %v3953_v10, %v3952_v22  ;;  %v3519_v50 = vsel %vm1337_vm2, %v3955_v18, %v3954_v32  ;;  %v1930_v52 = vmul.f32 %v3505_v15, %v1907_v17  ;;  %v3956_v38 = vrot.slane %v3131_v37, 1  ;;  %v3960_v22 = vld [vmem:[#allocation7_spill] sm:$0xff]  ;;  %v3962_v32 = vld [vmem:[#allocation26_spill] sm:$0xff] }
 0x228   : > { %v3523_v11 = vsel %vm3426_vm5, 0.0, %v1354_v62  ;;  %v3958_v60 = vrot.slane %v3957_v48, 1  ;;  %v1612_v28 = vmul.f32 %v2814_v2, %v3519_v50  ;;  %v1931_v25 = vmul.f32 %v3505_v15, %v1908_v24  ;;  %v3961_v62 = vld [vmem:[#allocation22_spill] sm:$0xff] }
 0x229   : > { %v1611_v20 = vmul.f32 %v2814_v2, %v3523_v11  ;;  %v3537_v26 = vsel %vm1478_vm4, %v3956_v38, %v1496_v46  ;;  %v1932_v29 = vmul.f32 %v3505_v15, %v1909_v14  ;;  %v1933_v42 = vmul.f32 %v3505_v15, %v1910_v44 }
 0x22a   : > { %v1499_v34 = vsel %vm1478_vm4, %v1496_v46, %v3958_v60  ;;  %v1953_v54 = vadd.f32 %v3529_v33, %v1930_v52  ;;  %v1661_v10 = vadd.f32 %v3960_v22, %v3959_v63  ;;  %v1664_v18 = vadd.f32 %v3962_v32, %v1612_v28  ;;  %v3963_v60 = vld [vmem:[#allocation9_spill] sm:$0xff] }
 0x22b   : > { %v1588_v13 = vsel %vm3463_vm6, 0.0, %v1499_v34  ;;  %v1663_v17 = vadd.f32 %v3961_v62, %v1611_v20  ;;  %v1954_v46 = vadd.f32 %v3529_v33, %v1931_v25  ;;  %v1955_v24 = vadd.f32 %v3529_v33, %v1932_v29  ;;  %v3964_v25 = vld [vmem:[#allocation20_spill] sm:$0xff]  ;;  %v3966_v32 = vld [vmem:[#allocation13_spill] sm:$0xff] }
 0x22c   : > { %v1956_v14 = vadd.f32 %v3529_v33, %v1933_v42  ;;  %v1682_v44 = vmul.f32 %v2827_v6, %v3202_v19  ;;  %v1969_v36 = vmax.f32 %v1953_v54, 0.0  ;;  %v1683_v52 = vmul.f32 %v2827_v6, %v3537_v26  ;;  %v3965_v62 = vld [vmem:[#allocation12_spill] sm:$0xff] }
 0x22d   : > { %v1684_v38 = vmul.f32 %v2827_v6, %v1588_v13  ;;  %v1695_v20 = vadd.f32 %v3414_v4, %v3963_v60  ;;  %v1970_v34 = vmax.f32 %v1954_v46, 0.0  ;;  %v1971_v28 = vmax.f32 %v1955_v24, 0.0  ;;  %v3967_v54 = vld [vmem:[#allocation4_spill] sm:$0xff] }
 0x22e   : > { %v1972_v63 = vmax.f32 %v1956_v14, 0.0  ;;  %v1696_v22 = vadd.f32 %v1680_v5, %v3964_v25  ;;  %v1985_v29 = vmin.f32 %v1969_v36, 6.0  ;;  %v1697_v42 = vadd.f32 %v3965_v62, %v1661_v10  ;;  %v3971_v5 = vld [vmem:[#allocation11_spill] sm:$0xff]  ;;  %v3972_v36 = vld [vmem:[#allocation29_spill] sm:$0xff]  ;;  %v3973_v60 = vld [vmem:[#allocation24_spill] sm:$0xff] }
 0x22f   : > { %v1698_v31 = vadd.f32 %v1682_v44, %v3966_v32  ;;  %v1699_v1 = vadd.f32 %v1683_v52, %v1663_v17  ;;  %v3968_v58 = vand.u32 15, %v3967_v54  ;;  %v1986_v12 = vmin.f32 %v1970_v34, 6.0  ;;  %v3975_v32 = vld [vmem:[#allocation10_spill] sm:$0xff] }
 0x230   : > { %v1987_v0 = vmin.f32 %v1971_v28, 6.0  ;;  %v1988_v4 = vmin.f32 %v1972_v63, 6.0  ;;  %v1700_v46 = vadd.f32 %v1684_v38, %v1664_v18  ;;  %v1715_v24 = vmul.f32 %v2829_v7, %v3155_v55 }
 0x231   : > { %vm3569_vm2 = vcmp.eq.s32.totalorder %v3968_v58, 15  ;;  %v1716_v14 = vmul.f32 %v2829_v7, %v3971_v5  ;;  %v1717_v10 = vmul.f32 %v2829_v7, %v3523_v11  ;;  %v1718_v17 = vmul.f32 %v2829_v7, %v3519_v50 }
 0x232   : > { %v2001_v58 = vpack.c.bf16 %v1986_v12, %v1985_v29  ;;  %v2002_v44 = vpack.c.bf16 %v1988_v4, %v1987_v0  ;;  %v1719_v52 = vmul.f32 %v2829_v7, %v3972_v36  ;;  %v1720_v18 = vmul.f32 %v2829_v7, %v3973_v60  ;;  %v3974_v0 = vld [vmem:[#allocation8_spill] sm:$0xff]  ;;  %v3976_v4 = vld [vmem:[#allocation23_spill] sm:$0xff] }
 0x233   : > { %v1731_v38 = vadd.f32 %v1715_v24, %v1695_v20  ;;  %v1732_v34 = vadd.f32 %v1716_v14, %v1696_v22  ;;  %v1733_v55 = vadd.f32 %v1717_v10, %v1697_v42  ;;  %v1734_v28 = vadd.f32 %v1718_v17, %v1698_v31  ;;  %v3977_v22 = vld [vmem:[#allocation27_spill] sm:$0xff] }
 0x234   : > { %2490 = vmatprep.mubr.bf16.mxu0 %v2001_v58  ;;  %v1735_v63 = vadd.f32 %v1719_v52, %v1699_v1  ;;  %v3585_v25 = vadd.f32 %v1720_v18, %v1700_v46  ;;  %v1787_v62 = vmul.f32 %v2831_v8, %v3061_v45  ;;  %v1788_v12 = vmul.f32 %v2831_v8, %v3202_v19  ;;  %v3978_v46 = vld [vmem:[#allocation5_spill] sm:$0xff] }
 0x235   : > { %2491 = vmatmul.mubr.bf16.vlgmr.msra.gmra.mxu0 %v2002_v44  ;;  %v1767_v29 = vadd.f32 %v3974_v0, %v1731_v38  ;;  %v1768_v54 = vadd.f32 %v3975_v32, %v1732_v34  ;;  %v1769_v20 = vadd.f32 %v3976_v4, %v1733_v55  ;;  %v1770_v42 = vadd.f32 %v3977_v22, %v1734_v28  ;;  %v3982_v34 = vld [vmem:[#allocation15_spill] sm:$0xff] }
 0x236   : > { %v1789_v31 = vmul.f32 %v2831_v8, %v3537_v26  ;;  %v1790_v1 = vmul.f32 %v2831_v8, %v1588_v13  ;;  %v1823_v45 = vmul.f32 %v2844_v16, %v3523_v11  ;;  %v1824_v19 = vmul.f32 %v2844_v16, %v3519_v50 }
 0x237   : > { %v3979_v24 = vand.u32 15, %v3978_v46  ;;  %v1803_v14 = vadd.f32 %v1787_v62, %v1767_v29  ;;  %v1804_v10 = vadd.f32 %v1788_v12, %v1768_v54  ;;  %v1859_v17 = vmul.f32 %v2833_v9, %v3131_v37  ;;  %v3985_v12 = vld [vmem:[#allocation17_spill] sm:$0xff]  ;;  %v3989_v46 = vld [vmem:[#allocation28_spill] sm:$0xff] }
 0x238   : > { %v1860_v58 = vmul.f32 %v2833_v9, %v3143_v41  ;;  %v1805_v44 = vadd.f32 %v1789_v31, %v1769_v20  ;;  %v1806_v52 = vadd.f32 %v1790_v1, %v1770_v42  ;;  %v1895_v11 = vmul.f32 %v3480_v59, %v3537_v26  ;;  %v3988_v42 = vld [vmem:[#allocation19_spill] sm:$0xff] }
 0x239   : > { %vm3604_vm7 = vcmp.eq.s32.totalorder %v3979_v24, 15  ;;  %v1896_v50 = vmul.f32 %v3480_v59, %v1588_v13  ;;  %v1839_v18 = vadd.f32 %v1823_v45, %v1803_v14  ;;  %v1840_v38 = vadd.f32 %v1824_v19, %v1804_v10 }
 0x23a   : > { %v3983_v55 = vrot.slane %v3982_v34, 1  ;;  %v3984_v28 = vrot.slane %v3957_v48, 1  ;;  %v3986_v37 = vrot.slane %v3985_v12, 1  ;;  %v1613_v26 = vmul.f32 %v2814_v2, %v3972_v36 }
 0x23b   : > { %v1875_v54 = vadd.f32 %v1859_v17, %v1839_v18  ;;  %v1876_v4 = vadd.f32 %v1860_v58, %v1840_v38  ;;  %v1825_v1 = vmul.f32 %v2844_v16, %v3972_v36  ;;  %v1826_v43 = vmul.f32 %v2844_v16, %v3973_v60 }
 0x23c   : > { %v1501_v62 = vsel %vm1478_vm4, %v3984_v28, %v3983_v55  ;;  %v3987_v0 = vmov %v3983_v55  ;;  %v1665_v31 = vadd.f32 %v3988_v42, %v1613_v26  ;;  %v1861_v2 = vmul.f32 %v2833_v9, %v3957_v48  ;;  %v3995_v26 = vld [vmem:[#allocation21_spill] sm:$0xff]  ;;  %v3996_v42 = vld [vmem:[#allocation34_spill] sm:$0xff] }
 0x23d   : > { %v1503_v41 = vsel %vm1478_vm4, %v3987_v0, %v3986_v37  ;;  %v1685_v13 = vmul.f32 %v2827_v6, %v1501_v62  ;;  %v1791_v32 = vmul.f32 %v2831_v8, %v1501_v62  ;;  %v1911_v45 = vadd.f32 %v1895_v11, %v1875_v54 }
 0x23e   : > { %v1590_v29 = vsel %vm3569_vm2, 0.0, %v1503_v41  ;;  %v1912_v19 = vadd.f32 %v1896_v50, %v1876_v4  ;;  %v1862_v14 = vmul.f32 %v2833_v9, %v3982_v34  ;;  %v1841_v17 = vadd.f32 %v1825_v1, %v1805_v44  ;;  %v3992_v34 = vld [vmem:[#allocation16_spill] sm:$0xff] }
 0x23f   : > { %v1686_v20 = vmul.f32 %v2827_v6, %v1590_v29  ;;  %v1792_v22 = vmul.f32 %v2831_v8, %v1590_v29  ;;  %v1701_v10 = vadd.f32 %v1685_v13, %v1665_v31  ;;  %v1842_v58 = vadd.f32 %v1826_v43, %v1806_v52 }
 0x240   : > { %v1897_v18 = vmul.f32 %v3480_v59, %v1501_v62  ;;  %v1934_v36 = vmul.f32 %v3505_v15, %v1911_v45  ;;  %v1935_v38 = vmul.f32 %v3505_v15, %v1912_v19  ;;  %v1898_v60 = vmul.f32 %v3480_v59, %v1590_v29 }
 0x241   : > { %v1702_v24 = vadd.f32 %v1686_v20, %v3989_v46  ;;  %v3990_v48 = vrot.slane %v3314_v57, 1  ;;  %v3991_v11 = vmov %v3986_v37  ;;  %v1877_v55 = vadd.f32 %v1861_v2, %v1841_v17  ;;  %v3997_v2 = vld [vmem:[#allocation25_spill] sm:$0xff]  ;;  %v3998_v17 = vld [vmem:[#allocation6_spill] sm:$0xff] }
 0x242   : > { %v1878_v28 = vadd.f32 %v1862_v14, %v1842_v58  ;;  %v3993_v37 = vrot.slane %v3992_v34, 1  ;;  %v1957_v0 = vadd.f32 %v3529_v33, %v1934_v36  ;;  %v1958_v41 = vadd.f32 %v3529_v33, %v1935_v38 }
 0x243   : > { %v1505_v50 = vsel %vm1478_vm4, %v3991_v11, %v3990_v48  ;;  %v3994_v44 = vmov %v3990_v48  ;;  %v1771_v13 = vadd.f32 %v3995_v26, %v1735_v63  ;;  %v1913_v54 = vadd.f32 %v1897_v18, %v1877_v55  ;;  %v4002_v11 = vld [vmem:[#allocation31_spill] sm:$0xff] }
 0x244   : > { %v1507_v52 = vsel %vm1478_vm4, %v3994_v44, %v3993_v37  ;;  %v1687_v62 = vmul.f32 %v2827_v6, %v1505_v50  ;;  %v1914_v4 = vadd.f32 %v1898_v60, %v1878_v28  ;;  %v1973_v1 = vmax.f32 %v1957_v0, 0.0 }
 0x245   : > { %v1592_v29 = vsel %vm3604_vm7, 0.0, %v1507_v52  ;;  %v1974_v43 = vmax.f32 %v1958_v41, 0.0  ;;  %v1772_v45 = vadd.f32 %v3997_v2, %v3585_v25  ;;  %v1793_v19 = vmul.f32 %v2831_v8, %v1505_v50 }
 0x246   : > { %v1688_v20 = vmul.f32 %v2827_v6, %v1592_v29  ;;  %v1703_v31 = vadd.f32 %v1687_v62, %v3996_v42  ;;  %v1936_v46 = vmul.f32 %v3505_v15, %v1913_v54  ;;  %v1937_v5 = vmul.f32 %v3505_v15, %v1914_v4 }
 0x247   : > { %v1794_v63 = vmul.f32 %v2831_v8, %v1592_v29  ;;  %v3999_v58 = vand.u32 15, %v3998_v17  ;;  %v1989_v18 = vmin.f32 %v1973_v1, 6.0  ;;  %v1990_v36 = vmin.f32 %v1974_v43, 6.0  ;;  %v4005_v17 = vld [vmem:[#allocation35_spill] sm:$0xff] }
 0x248   : > { %v1704_v14 = vadd.f32 %v1688_v20, %v3395_v39  ;;  %v1807_v38 = vadd.f32 %v1791_v32, %v1771_v13  ;;  %v1808_v25 = vadd.f32 %v1792_v22, %v1772_v45  ;;  %v1959_v60 = vadd.f32 %v3529_v33, %v1936_v46  ;;  %v4004_v45 = vld [vmem:[#allocation33_spill] sm:$0xff] }
 0x249   : > { %vm3674_vm8 = vcmp.eq.s32.totalorder %v3999_v58, 15  ;;  %v1960_v48 = vadd.f32 %v3529_v33, %v1937_v5  ;;  %v1827_v55 = vmul.f32 %v2844_v16, %v4002_v11  ;;  %v1828_v39 = vmul.f32 %v2844_v16, %v3352_v30  ;;  %v4006_v58 = vld [vmem:[#allocation44_spill] sm:$0xff] }
 0x24a   : > { %v2003_v28 = vpack.c.bf16 %v1990_v36, %v1989_v18  ;;  %v1863_v37 = vmul.f32 %v2833_v9, %v3985_v12  ;;  %v1864_v44 = vmul.f32 %v2833_v9, %v3314_v57  ;;  %v1899_v32 = vmul.f32 %v3480_v59, %v1505_v50  ;;  %v4008_v36 = vld [vmem:[#allocation38_spill] sm:$0xff] }
 0x24b   : > { %v1975_v22 = vmax.f32 %v1959_v60, 0.0  ;;  %v1976_v52 = vmax.f32 %v1960_v48, 0.0  ;;  %v1843_v62 = vadd.f32 %v1827_v55, %v1807_v38  ;;  %v1844_v0 = vadd.f32 %v1828_v39, %v1808_v25  ;;  %v4010_v60 = vld [vmem:[#allocation40_spill] sm:$0xff] }
 0x24c   : > { %2494 = vmatprep.mubr.bf16.mxu1 %v2003_v28  ;;  %v1900_v41 = vmul.f32 %v3480_v59, %v1592_v29  ;;  %v1721_v26 = vmul.f32 %v2829_v7, %v4002_v11  ;;  %v1738_v30 = vadd.f32 %v3369_v3, %v1702_v24  ;;  %v1829_v12 = vmul.f32 %v2844_v16, %v3363_v35  ;;  %v4003_v3 = vld [vmem:[#allocation32_spill] sm:$0xff] }
 0x24d   : > { %v1991_v13 = vmin.f32 %v1975_v22, 6.0  ;;  %v1992_v54 = vmin.f32 %v1976_v52, 6.0  ;;  %v1879_v57 = vadd.f32 %v1863_v37, %v1843_v62  ;;  %v1880_v4 = vadd.f32 %v1864_v44, %v1844_v0  ;;  %v4013_v22 = vld [vmem:[#allocation37_spill] sm:$0xff] }
 0x24e   : > { %v1737_v50 = vadd.f32 %v1721_v26, %v1701_v10  ;;  %v1774_v20 = vadd.f32 %v3357_v49, %v1738_v30  ;;  %v1830_v42 = vmul.f32 %v2844_v16, %v3300_v21  ;;  %v1865_v29 = vmul.f32 %v2833_v9, %v3992_v34  ;;  %v4014_v30 = vld [vmem:[#allocation36_spill] sm:$0xff] }
 0x24f   : > { %v2004_v1 = vpack.c.bf16 %v1992_v54, %v1991_v13  ;;  %v1915_v43 = vadd.f32 %v1899_v32, %v1879_v57  ;;  %v1916_v2 = vadd.f32 %v1900_v41, %v1880_v4  ;;  %v1866_v24 = vmul.f32 %v2833_v9, %v4003_v3  ;;  %v4015_v57 = vld [vmem:[#allocation30_spill] sm:$0xff] }
 0x250   : > { %v1773_v46 = vadd.f32 %v4004_v45, %v1737_v50  ;;  %v1810_v5 = vadd.f32 %v1794_v63, %v1774_v20  ;;  %v1901_v10 = vmul.f32 %v3480_v59, %v4005_v17  ;;  %v1902_v49 = vmul.f32 %v3480_v59, %v4006_v58 }
 0x251   : > { %2495 = vmatmul.mubr.bf16.vlgmr.msra.gmra.mxu1 %v2004_v1  ;;  %v1938_v21 = vmul.f32 %v3505_v15, %v1915_v43  ;;  %v1939_v34 = vmul.f32 %v3505_v15, %v1916_v2  ;;  %v4007_v18 = vrot.slane %v3402_v47, 1  ;;  %v4009_v38 = vrot.slane %v4008_v36, 1 }
 0x252   : > { %v4011_v48 = vrot.slane %v4010_v60, 1  ;;  %v1809_v55 = vadd.f32 %v1793_v19, %v1773_v46  ;;  %v1846_v39 = vadd.f32 %v1830_v42, %v1810_v5  ;;  %v1723_v37 = vmul.f32 %v2829_v7, %v3363_v35  ;;  %v4016_v42 = vld [vmem:[#allocation43_spill] sm:$0xff]  ;;  %v4020_v60 = vld [vmem:[#allocation41_spill] sm:$0xff] }
 0x253   : > { %v1513_v25 = vsel %vm1478_vm4, %v4009_v38, %v4007_v18  ;;  %v4012_v63 = vmov %v4007_v18  ;;  %v1961_v44 = vadd.f32 %v3529_v33, %v1938_v21  ;;  %v1962_v32 = vadd.f32 %v3529_v33, %v1939_v34 }
 0x254   : > { %v1515_v11 = vsel %vm1478_vm4, %v4012_v63, %v4011_v48  ;;  %v1740_v52 = vadd.f32 %v4013_v22, %v1704_v14  ;;  %v1795_v62 = vmul.f32 %v2831_v8, %v4005_v17  ;;  %v1845_v47 = vadd.f32 %v1829_v12, %v1809_v55 }
 0x255   : > { %v1596_v28 = vsel %vm3674_vm8, 0.0, %v1515_v11  ;;  %v1882_v0 = vadd.f32 %v1866_v24, %v1846_v39  ;;  %v1739_v41 = vadd.f32 %v1723_v37, %v1703_v31  ;;  %v1796_v19 = vmul.f32 %v2831_v8, %v4006_v58 }
 0x256   : > { %v1977_v6 = vmax.f32 %v1961_v44, 0.0  ;;  %v1978_v26 = vmax.f32 %v1962_v32, 0.0  ;;  %v1776_v13 = vadd.f32 %v4014_v30, %v1740_v52  ;;  %v1797_v7 = vmul.f32 %v2831_v8, %v1513_v25  ;;  %v4025_v44 = vld [vmem:[#allocation42_spill] sm:$0xff] }
 0x257   : > { %v1881_v35 = vadd.f32 %v1865_v29, %v1845_v47  ;;  %v1918_v54 = vadd.f32 %v1902_v49, %v1882_v0  ;;  %v1775_v4 = vadd.f32 %v4015_v57, %v1739_v41  ;;  %v1798_v14 = vmul.f32 %v2831_v8, %v1596_v28 }
 0x258   : > { %v1993_v50 = vmin.f32 %v1977_v6, 6.0  ;;  %v1994_v20 = vmin.f32 %v1978_v26, 6.0  ;;  %v1812_v12 = vadd.f32 %v1796_v19, %v1776_v13  ;;  %v1831_v31 = vmul.f32 %v2844_v16, %v4016_v42 }
 0x259   : > { %v1917_v1 = vadd.f32 %v1901_v10, %v1881_v35  ;;  %v1941_v43 = vmul.f32 %v3505_v15, %v1918_v54  ;;  %v1811_v2 = vadd.f32 %v1795_v62, %v1775_v4  ;;  %v1832_v3 = vmul.f32 %v2844_v16, %v3437_v61 }
 0x25a   : > { %v2005_v24 = vpack.c.bf16 %v1994_v20, %v1993_v50  ;;  %v1903_v29 = vmul.f32 %v3480_v59, %v1513_v25  ;;  %v1904_v45 = vmul.f32 %v3480_v59, %v1596_v28  ;;  %v4017_v8 = vrot.slane %v3400_v40, 1 }
 0x25b   : > { %v4018_v46 = vmov %v4011_v48  ;;  %v1940_v17 = vmul.f32 %v3505_v15, %v1917_v1  ;;  %v1964_v10 = vadd.f32 %v3529_v33, %v1941_v43  ;;  %v1847_v58 = vadd.f32 %v1831_v31, %v1811_v2 }
 0x25c   : > { %v1517_v5 = vsel %vm1478_vm4, %v4018_v46, %v4017_v8  ;;  %v1848_v49 = vadd.f32 %v1832_v3, %v1812_v12  ;;  %v1870_v61 = vmul.f32 %v2833_v9, %v3400_v40  ;;  %2498 = vmatprep.mubr.bf16.mxu1 %v2005_v24  ;;  %v1813_v21 = vadd.f32 %v1797_v7, %v3467_v51  ;;  %v4021_v9 = vld [vmem:[#allocation46_spill] sm:$0xff] }
 0x25d   : > { %v1814_v34 = vadd.f32 %v1798_v14, %v3488_v56  ;;  %v4019_v18 = vsel %vm3334_vm1, 0.0, %v3440_v23  ;;  %v1963_v38 = vadd.f32 %v3529_v33, %v1940_v17  ;;  %v1980_v25 = vmax.f32 %v1964_v10, 0.0  ;;  %v4023_v56 = vld [vmem:[#allocation45_spill] sm:$0xff] }
 0x25e   : > { %v1833_v36 = vmul.f32 %v2844_v16, %v4019_v18  ;;  %v1883_v48 = vadd.f32 %v4020_v60, %v1847_v58  ;;  %v1884_v63 = vadd.f32 %v3455_v27, %v1848_v49  ;;  %v1905_v51 = vmul.f32 %v3480_v59, %v1517_v5 }
 0x25f   : > { %v1850_v40 = vadd.f32 %v4021_v9, %v1814_v34  ;;  %v4024_v53 = vsel %vm3328_vm0, 0.0, %v4023_v56  ;;  %v1979_v39 = vmax.f32 %v1963_v38, 0.0  ;;  %v1996_v16 = vmin.f32 %v1980_v25, 6.0 }
 0x260   : > { %v1849_v11 = vadd.f32 %v1833_v36, %v1813_v21  ;;  %v1906_v23 = vmul.f32 %v3480_v59, %v4024_v53  ;;  %v1919_v28 = vadd.f32 %v1903_v29, %v1883_v48  ;;  %v1920_v37 = vadd.f32 %v1904_v45, %v1884_v63 }
 0x261   : > { %v1886_v22 = vadd.f32 %v1870_v61, %v1850_v40  ;;  %v1995_v52 = vmin.f32 %v1979_v39, 6.0 }
 0x262   : > { %v1885_v32 = vadd.f32 %v4025_v44, %v1849_v11  ;;  %v1942_v27 = vmul.f32 %v3505_v15, %v1919_v28  ;;  %v1943_v62 = vmul.f32 %v3505_v15, %v1920_v37 }
 0x263   : > { %v1922_v0 = vadd.f32 %v1906_v23, %v1886_v22  ;;  %v2006_v41 = vpack.c.bf16 %v1996_v16, %v1995_v52 }
 0x264   : > { %v1921_v47 = vadd.f32 %v1905_v51, %v1885_v32  ;;  %v1965_v19 = vadd.f32 %v3529_v33, %v1942_v27  ;;  %v1966_v6 = vadd.f32 %v3529_v33, %v1943_v62 }
 0x265   : > { %v1945_v26 = vmul.f32 %v3505_v15, %v1922_v0  ;;  %2499 = vmatmul.mubr.bf16.gmra.mxu1 %v2006_v41 }
 0x266   : > { %v1944_v59 = vmul.f32 %v3505_v15, %v1921_v47  ;;  %v1981_v30 = vmax.f32 %v1965_v19, 0.0  ;;  %v1982_v13 = vmax.f32 %v1966_v6, 0.0  ;;  %v2419_v15 = vld [vmem:[%s3812_s10] ss:$0 sm:$0xff] }
 0x267   : > { %v1968_v35 = vadd.f32 %v3529_v33, %v1945_v26  ;;  %v2573_v26 = vld [vmem:[%s2726_s22] sm:$0xf] }
 0x268   : > { %v1967_v7 = vadd.f32 %v3529_v33, %v1944_v59  ;;  %v1997_v54 = vmin.f32 %v1981_v30, 6.0  ;;  %v1998_v57 = vmin.f32 %v1982_v13, 6.0  ;;  %v2420_v33 = vld [vmem:[%s3813_s11] ss:$0 sm:$0xff] }
 0x269   : > { %v1984_v14 = vmax.f32 %v1968_v35, 0.0 }
 0x26a   : > { %v1983_v4 = vmax.f32 %v1967_v7, 0.0  ;;  %v2007_v50 = vpack.c.bf16 %v1998_v57, %v1997_v54 }
 0x26b   : > { %v2000_v12 = vmin.f32 %v1984_v14, 6.0 }
 0x26c   : > { %v1999_v20 = vmin.f32 %v1983_v4, 6.0  ;;  %2502 = vmatprep.mubr.bf16.mxu1 %v2007_v50 }
 0x26e   : > { %v2008_v42 = vpack.c.bf16 %v2000_v12, %v1999_v20 }
 0x270   : > { %2503 = vmatmul.mubr.bf16.gmra.mxu1 %v2008_v42 }
 0x2f5   : > { %v2492_v31 = vpop.f32.mrf.mxu0 }
 0x2f6   : > { %v2179_v45 = vmul.f32 %v2492_v31, %v2419_v15 }
 0x2f7   : > { %v2107_v1 = vpop.f32.mrf.mxu0 }
 0x2f8   : > { %v2177_v43 = vmul.f32 %v2419_v15, %v2107_v1  ;;  %v2202_v46 = vadd.f32 %v2420_v33, %v2179_v45 }
 0x2f9   : > { %v2493_v2 = vpop.f32.mrf.mxu0 }
 0x2fa   : > { %v2200_v3 = vadd.f32 %v2420_v33, %v2177_v43  ;;  %v2180_v5 = vmul.f32 %v2493_v2, %v2419_v15 }
 0x2fb   : > { %v2110_v24 = vpop.f32.mrf.mxu0 }
 0x2fc   : > { %v2178_v29 = vmul.f32 %v2419_v15, %v2110_v24  ;;  %2216 = vxpose.xlu0.b32.start [1/16] (narrow) %v2200_v3, 8  ;;  %v2203_v17 = vadd.f32 %v2420_v33, %v2180_v5 }
 0x2fe   : > { %v2201_v8 = vadd.f32 %v2420_v33, %v2178_v29 }
 0x300   : > { %2217 = vxpose.xlu0.b32.cont [2/16] (narrow) %v2201_v8, 8 }
 0x304   : > { %2218 = vxpose.xlu0.b32.cont [3/16] (narrow) %v2202_v46, 8 }
 0x308   : > { %2219 = vxpose.xlu0.b32.cont [4/16] (narrow) %v2203_v17, 8 }
 0x311   : > { %v2496_v10 = vpop.f32.mrf.mxu1 }
 0x312   : > { %v2183_v36 = vmul.f32 %v2496_v10, %v2419_v15 }
 0x313   : > { %v2123_v58 = vpop.f32.mrf.mxu1 }
 0x314   : > { %v2181_v49 = vmul.f32 %v2419_v15, %v2123_v58  ;;  %v2206_v25 = vadd.f32 %v2420_v33, %v2183_v36 }
 0x315   : > { %v2497_v61 = vpop.f32.mrf.mxu1 }
 0x316   : > { %v2204_v21 = vadd.f32 %v2420_v33, %v2181_v49  ;;  %v2184_v60 = vmul.f32 %v2497_v61, %v2419_v15 }
 0x317   : > { %v2126_v34 = vpop.f32.mrf.mxu1 }
 0x318   : > { %v2182_v18 = vmul.f32 %v2419_v15, %v2126_v34  ;;  %2220 = vxpose.xlu0.b32.cont [5/16] (narrow) %v2204_v21, 8  ;;  %v2207_v48 = vadd.f32 %v2420_v33, %v2184_v60 }
 0x31a   : > { %v2205_v38 = vadd.f32 %v2420_v33, %v2182_v18 }
 0x31c   : > { %2221 = vxpose.xlu0.b32.cont [6/16] (narrow) %v2205_v38, 8 }
 0x320   : > { %2222 = vxpose.xlu0.b32.cont [7/16] (narrow) %v2206_v25, 8 }
 0x324   : > { %2223 = vxpose.xlu0.b32.cont [8/16] (narrow) %v2207_v48, 8 }
 0x325   : > { %v2500_v63 = vpop.f32.mrf.mxu1 }
 0x326   : > { %v2187_v53 = vmul.f32 %v2500_v63, %v2419_v15 }
 0x327   : > { %v2139_v11 = vpop.f32.mrf.mxu1 }
 0x328   : > { %v2185_v9 = vmul.f32 %v2419_v15, %v2139_v11  ;;  %v2210_v44 = vadd.f32 %v2420_v33, %v2187_v53 }
 0x329   : > { %v2501_v40 = vpop.f32.mrf.mxu1 }
 0x32a   : > { %v2208_v51 = vadd.f32 %v2420_v33, %v2185_v9  ;;  %v2188_v32 = vmul.f32 %v2501_v40, %v2419_v15 }
 0x32b   : > { %v2142_v55 = vpop.f32.mrf.mxu1 }
 0x32c   : > { %v2186_v56 = vmul.f32 %v2419_v15, %v2142_v55  ;;  %2224 = vxpose.xlu0.b32.cont [9/16] (narrow) %v2208_v51, 8  ;;  %v2211_v0 = vadd.f32 %v2420_v33, %v2188_v32 }
 0x32e   : > { %v2209_v23 = vadd.f32 %v2420_v33, %v2186_v56 }
 0x330   : > { %v2504_v39 = vpop.f32.mrf.mxu1  ;;  %2225 = vxpose.xlu0.b32.cont [10/16] (narrow) %v2209_v23, 8 }
 0x331   : > { %v2191_v16 = vmul.f32 %v2504_v39, %v2419_v15 }
 0x332   : > { %v2155_v28 = vpop.f32.mrf.mxu1 }
 0x333   : > { %v2214_v37 = vadd.f32 %v2420_v33, %v2191_v16  ;;  %v2189_v41 = vmul.f32 %v2419_v15, %v2155_v28 }
 0x334   : > { %v2505_v22 = vpop.f32.mrf.mxu1  ;;  %2226 = vxpose.xlu0.b32.cont [11/16] (narrow) %v2210_v44, 8 }
 0x335   : > { %v2192_v52 = vmul.f32 %v2505_v22, %v2419_v15  ;;  %v2212_v6 = vadd.f32 %v2420_v33, %v2189_v41 }
 0x336   : > { %v2158_v27 = vpop.f32.mrf.mxu1 }
 0x337   : > { %v2215_v62 = vadd.f32 %v2420_v33, %v2192_v52  ;;  %v2190_v47 = vmul.f32 %v2419_v15, %v2158_v27 }
 0x338   : > { %2227 = vxpose.xlu0.b32.cont [12/16] (narrow) %v2211_v0, 8 }
 0x339   : > { %v2213_v19 = vadd.f32 %v2420_v33, %v2190_v47 }
 0x33c   : > { %2228 = vxpose.xlu0.b32.cont [13/16] (narrow) %v2212_v6, 8 }
 0x340   : > { %2229 = vxpose.xlu0.b32.cont [14/16] (narrow) %v2213_v19, 8 }
 0x344   : > { %2230 = vxpose.xlu0.b32.cont [15/16] (narrow) %v2214_v37, 8 }
 0x348   : > { %2231 = vxpose.xlu0.b32.end [16/16] (narrow) %v2215_v62, 8 }
 0x388   : > { %v2232_v59 = vpop.trf.xlu0 }
 0x389   : > { %v2248_v30 = vadd.f32 %v2573_v26, %v2232_v59 }
 0x38b   : > { %2249 = vst [vmem:[%s548_s21] sm:$0xf] %v2248_v30 }
 0x38c PF: > { %s22_s25 = sadd.s32 1, %s2612_s25   ;;  %s4026_s27 = sld [smem:[#allocation2_spill]] }
 0x38d   : > { %p19_p11 = scmp.ge.s32.totalorder %s22_s25, 6   ;;  %s4027_s29 = sld [smem:[#allocation3_spill]] }
 0x38e   : > { %s4028_s21 = smov %s2604_s23  ;;  %s4029_s22 = smov %s2608_s24 }
 0x38f   :  { %21 = sbr.rel (!%p19_p11) target bundleno = 3 (0x3), region = 104 }
 0x392   : > { %s4030_s23 = smov %s4026_s27 }
 0x393   : > { %s4031_s24 = smov %s4027_s29 }

</bundles_post_ra>
